<compile_context>
chip_gen: v6e
topology: v6e:2x2x1
jax: 0.10.0
libtpu: 0.0.40
codegen_flags: <defaults>
</compile_context>

<pallas_src>
import jax
import jax.numpy as jnp
from jax import lax
from jax.experimental import pallas as pl
from jax.experimental.pallas import tpu as pltpu


# One-line lever for v6e/v7x: set to jnp.bfloat16 to halve MXU-operand traffic.
MATMUL_DTYPE = jnp.float32


def _dot(a, b):
    """MXU matmul with f32 accumulation; operands cast per MATMUL_DTYPE."""
    return jnp.dot(a.astype(MATMUL_DTYPE), b.astype(MATMUL_DTYPE),
                   preferred_element_type=jnp.float32)


def _prep_gru(w_ih, w_hh, b_ih, b_hh):
    """PyTorch GRU weights -> kernel-friendly layouts.

    Returns (wih_t (C,3H), bih_adj (1,3H), whh_t (H,3H), bhh_n (1,H)) where the
    r/z parts of b_hh are folded into the hoisted input-projection bias.
    """
    H = w_hh.shape[1]
    wih_t = jnp.transpose(w_ih)                       # (C, 3H), gate order r,z,n
    whh_t = jnp.transpose(w_hh)                       # (H, 3H)
    bih_adj = (b_ih + jnp.concatenate(
        [b_hh[:2 * H], jnp.zeros((H,), b_hh.dtype)])).reshape(1, 3 * H)
    bhh_n = b_hh[2 * H:3 * H].reshape(1, H)
    return wih_t, bih_adj, whh_t, bhh_n


# ----------------------------------------------------------------------------
# Kernel 1: gcn_gru branch (GCN over the sequence + GRU-2) fused with the plain
# GCN branch (last timestep only).  Per-batch grid step; all intermediates VMEM.
# ----------------------------------------------------------------------------
def _gcn_gru_kernel(x_ref, adj_ref, thb_ref, thc_ref,
                    wih_ref, bih_ref, whh_ref, bhhn_ref,
                    h_out_ref, gcn_out_ref, gi_scr):
    N = adj_ref.shape[0]
    TN = x_ref.shape[0]
    T = TN // N
    H = h_out_ref.shape[-1]

    adj = adj_ref[...]
    x = x_ref[...]                                    # (T*N, Cin), rows ordered (t, n)

    # ---- plain GCN branch on the last timestep (static, tile-aligned row slice).
    x_last = x[(T - 1) * N:T * N, :]
    gcn_out_ref[...] = jnp.maximum(
        _dot(adj, _dot(x_last, thc_ref[...])), 0.0).astype(gcn_out_ref.dtype)

    # ---- GCN over the whole sequence: ONE Theta matmul, per-t adjacency matmuls
    #      on static slices; result never leaves VMEM.
    xw = _dot(x, thb_ref[...])                        # (T*N, Cout)
    g = jnp.concatenate(
        [jnp.maximum(_dot(adj, xw[t * N:(t + 1) * N, :]), 0.0) for t in range(T)],
        axis=0)                                       # (T*N, Cout), rows (t, n)

    # ---- GRU-2 input projection hoisted out of the recurrence: ONE matmul for all
    #      timesteps, then split per-gate into the scratch so the serial loop only
    #      does clean lane-offset-0 loads.
    gi = _dot(g, wih_ref[...]) + bih_ref[...]         # (T*N, 3H)
    gi_scr[0, :, :] = gi[:, 0:H]
    gi_scr[1, :, :] = gi[:, H:2 * H]
    gi_scr[2, :, :] = gi[:, 2 * H:3 * H]

    whh = whh_ref[...]
    whh_r, whh_z, whh_n = whh[:, 0:H], whh[:, H:2 * H], whh[:, 2 * H:3 * H]
    bhh_n = bhhn_ref[...]

    # ---- serial recurrence: h carried in registers, T is a compile-time constant.
    h = jnp.zeros((N, H), jnp.float32)
    for t in range(T):
        lo, hi = t * N, (t + 1) * N
        gh_r = _dot(h, whh_r)
        gh_z = _dot(h, whh_z)
        gh_n = _dot(h, whh_n) + bhh_n
        r = jax.nn.sigmoid(gi_scr[0, lo:hi, :] + gh_r)
        z = jax.nn.sigmoid(gi_scr[1, lo:hi, :] + gh_z)
        n = jnp.tanh(gi_scr[2, lo:hi, :] + r * gh_n)
        h = n + z * (h - n)                           # == (1-z)*n + z*h
    h_out_ref[...] = h.astype(h_out_ref.dtype)


def gcn_gru_and_gcn(x_tm, adj, theta_b_t, theta_c_t, w_ih, w_hh, b_ih, b_hh, H):
    """x_tm: (B, T*N, Cin) time-major rows.  Returns (gcn_gru_out (B,N,H),
    gcn_out (B,N,Cout_c))."""
    B, TN, Cin = x_tm.shape
    N = adj.shape[0]
    Cout_b = theta_b_t.shape[1]
    Cout_c = theta_c_t.shape[1]
    wih_t, bih_adj, whh_t, bhh_n = _prep_gru(w_ih, w_hh, b_ih, b_hh)

    return pl.pallas_call(
        _gcn_gru_kernel,
        out_shape=(jax.ShapeDtypeStruct((B, N, H), jnp.float32),
                   jax.ShapeDtypeStruct((B, N, Cout_c), jnp.float32)),
        grid_spec=pltpu.PrefetchScalarGridSpec(
            num_scalar_prefetch=0,
            grid=(B,),
            in_specs=[
                pl.BlockSpec((None, TN, Cin), lambda b: (b, 0, 0)),
                pl.BlockSpec((N, N), lambda b: (0, 0)),
                pl.BlockSpec((Cin, Cout_b), lambda b: (0, 0)),
                pl.BlockSpec((Cin, Cout_c), lambda b: (0, 0)),
                pl.BlockSpec((Cout_b, 3 * H), lambda b: (0, 0)),
                pl.BlockSpec((1, 3 * H), lambda b: (0, 0)),
                pl.BlockSpec((H, 3 * H), lambda b: (0, 0)),
                pl.BlockSpec((1, H), lambda b: (0, 0)),
            ],
            out_specs=(pl.BlockSpec((None, N, H), lambda b: (b, 0, 0)),
                       pl.BlockSpec((None, N, Cout_c), lambda b: (b, 0, 0))),
            scratch_shapes=[pltpu.VMEM((3, TN, H), jnp.float32)],
        ),
        compiler_params=pltpu.CompilerParams(dimension_semantics=("parallel",)),
    )(x_tm, adj, theta_b_t, theta_c_t, wih_t, bih_adj, whh_t, bhh_n)


# ----------------------------------------------------------------------------
# Kernel 2: GRU-1 + GRU-3 fused (shared x read, interleaved recurrences) + the
# gru_gcn branch's follow-up GCN on GRU-1's last hidden.
# ----------------------------------------------------------------------------
def _dual_gru_kernel(x_ref, adj_ref, tha_ref,
                     wih1_ref, bih1_ref, whh1_ref, bhhn1_ref,
                     wih3_ref, bih3_ref, whh3_ref, bhhn3_ref,
                     grugcn_out_ref, gru_out_ref, gi1_scr, gi3_scr):
    N = adj_ref.shape[0]
    TN = x_ref.shape[0]
    T = TN // N
    H = gru_out_ref.shape[-1]

    x = x_ref[...]                                    # (T*N, Cin), rows (t, n)

    # ---- hoisted input projections (one matmul each, whole sequence), per-gate.
    gi1 = _dot(x, wih1_ref[...]) + bih1_ref[...]      # (T*N, 3H)
    gi3 = _dot(x, wih3_ref[...]) + bih3_ref[...]
    gi1_scr[0, :, :] = gi1[:, 0:H]
    gi1_scr[1, :, :] = gi1[:, H:2 * H]
    gi1_scr[2, :, :] = gi1[:, 2 * H:3 * H]
    gi3_scr[0, :, :] = gi3[:, 0:H]
    gi3_scr[1, :, :] = gi3[:, H:2 * H]
    gi3_scr[2, :, :] = gi3[:, 2 * H:3 * H]

    whh1 = whh1_ref[...]
    w1r, w1z, w1n = whh1[:, 0:H], whh1[:, H:2 * H], whh1[:, 2 * H:3 * H]
    whh3 = whh3_ref[...]
    w3r, w3z, w3n = whh3[:, 0:H], whh3[:, H:2 * H], whh3[:, 2 * H:3 * H]
    bn1 = bhhn1_ref[...]
    bn3 = bhhn3_ref[...]

    # ---- two independent recurrences in one unrolled loop (they interleave on the
    #      MXU / EUP, hiding each other's serial latency).  h carried in registers.
    h1 = jnp.zeros((N, H), jnp.float32)
    h3 = jnp.zeros((N, H), jnp.float32)
    for t in range(T):
        lo, hi = t * N, (t + 1) * N
        g1r = _dot(h1, w1r)
        g1z = _dot(h1, w1z)
        g1n = _dot(h1, w1n) + bn1
        g3r = _dot(h3, w3r)
        g3z = _dot(h3, w3z)
        g3n = _dot(h3, w3n) + bn3
        r1 = jax.nn.sigmoid(gi1_scr[0, lo:hi, :] + g1r)
        z1 = jax.nn.sigmoid(gi1_scr[1, lo:hi, :] + g1z)
        n1 = jnp.tanh(gi1_scr[2, lo:hi, :] + r1 * g1n)
        h1 = n1 + z1 * (h1 - n1)
        r3 = jax.nn.sigmoid(gi3_scr[0, lo:hi, :] + g3r)
        z3 = jax.nn.sigmoid(gi3_scr[1, lo:hi, :] + g3z)
        n3 = jnp.tanh(gi3_scr[2, lo:hi, :] + r3 * g3n)
        h3 = n3 + z3 * (h3 - n3)

    # ---- gru_gcn branch: GCN on the GRU-1 last hidden
    #      (== GCN(full GRU sequence)[:, :, -1, :], see header comment).
    grugcn_out_ref[...] = jnp.maximum(
        _dot(adj_ref[...], _dot(h1, tha_ref[...])), 0.0).astype(grugcn_out_ref.dtype)
    gru_out_ref[...] = h3.astype(gru_out_ref.dtype)


def dual_gru_and_gcn(x_tm, adj, theta_a_t,
                     w_ih1, w_hh1, b_ih1, b_hh1,
                     w_ih3, w_hh3, b_ih3, b_hh3, H):
    """Returns (gru_gcn_out (B,N,Cout_a), gru_out (B,N,H))."""
    B, TN, Cin = x_tm.shape
    N = adj.shape[0]
    Cout_a = theta_a_t.shape[1]
    wih1_t, bih1, whh1_t, bhhn1 = _prep_gru(w_ih1, w_hh1, b_ih1, b_hh1)
    wih3_t, bih3, whh3_t, bhhn3 = _prep_gru(w_ih3, w_hh3, b_ih3, b_hh3)

    return pl.pallas_call(
        _dual_gru_kernel,
        out_shape=(jax.ShapeDtypeStruct((B, N, Cout_a), jnp.float32),
                   jax.ShapeDtypeStruct((B, N, H), jnp.float32)),
        grid_spec=pltpu.PrefetchScalarGridSpec(
            num_scalar_prefetch=0,
            grid=(B,),
            in_specs=[
                pl.BlockSpec((None, TN, Cin), lambda b: (b, 0, 0)),
                pl.BlockSpec((N, N), lambda b: (0, 0)),
                pl.BlockSpec((H, Cout_a), lambda b: (0, 0)),
                pl.BlockSpec((Cin, 3 * H), lambda b: (0, 0)),
                pl.BlockSpec((1, 3 * H), lambda b: (0, 0)),
                pl.BlockSpec((H, 3 * H), lambda b: (0, 0)),
                pl.BlockSpec((1, H), lambda b: (0, 0)),
                pl.BlockSpec((Cin, 3 * H), lambda b: (0, 0)),
                pl.BlockSpec((1, 3 * H), lambda b: (0, 0)),
                pl.BlockSpec((H, 3 * H), lambda b: (0, 0)),
                pl.BlockSpec((1, H), lambda b: (0, 0)),
            ],
            out_specs=(pl.BlockSpec((None, N, Cout_a), lambda b: (b, 0, 0)),
                       pl.BlockSpec((None, N, H), lambda b: (b, 0, 0))),
            scratch_shapes=[pltpu.VMEM((3, TN, H), jnp.float32),
                            pltpu.VMEM((3, TN, H), jnp.float32)],
        ),
        compiler_params=pltpu.CompilerParams(dimension_semantics=("parallel",)),
    )(x_tm, adj, theta_a_t,
      wih1_t, bih1, whh1_t, bhhn1,
      wih3_t, bih3, whh3_t, bhhn3)


# ----------------------------------------------------------------------------
# Kernel 3: fused 4-slot attention + fc1/fc2 (row-chunked over B*N rows).
# ----------------------------------------------------------------------------
def _att_fc_kernel(e0_ref, e1_ref, e2_ref, e3_ref,
                   wkqv_ref, bkqv_ref, w12_ref, b12_ref, o_ref):
    TR, H = e0_ref.shape
    # Row-stack the 4 slots (tile-aligned sublane concat) -> ONE K/Q/V projection
    # against [Wk|Wq|Wv] instead of 12 tiny matmuls.
    es = jnp.concatenate([e0_ref[...], e1_ref[...], e2_ref[...], e3_ref[...]], axis=0)
    kqv = _dot(es, wkqv_ref[...]) + bkqv_ref[...]                      # (4*TR, 3H)
    k = [kqv[i * TR:(i + 1) * TR, 0:H] for i in range(4)]
    q = [kqv[i * TR:(i + 1) * TR, H:2 * H] for i in range(4)]
    v = [kqv[i * TR:(i + 1) * TR, 2 * H:3 * H] for i in range(4)]

    # 4x4 per-row attention scores via elementwise mult + lane reductions
    # (VPU/XLU work; no per-row tiny batched matmuls).
    s = [[jnp.sum(k[i] * q[j], axis=-1, keepdims=True) for j in range(4)]
         for i in range(4)]
    att = []
    for i in range(4):
        m = jnp.maximum(jnp.maximum(s[i][0], s[i][1]),
                        jnp.maximum(s[i][2], s[i][3]))
        e_ij = [jnp.exp(s[i][j] - m) for j in range(4)]
        denom = e_ij[0] + e_ij[1] + e_ij[2] + e_ij[3]
        num = e_ij[0] * v[0] + e_ij[1] * v[1] + e_ij[2] * v[2] + e_ij[3] * v[3]
        att.append(num / denom)                                        # (TR, H)

    # fc1 | fc2 against the stacked (4H, 2O) weight: 4 partial matmuls on static
    # row-slices (no in-kernel lane concatenate), ONE lane-wider (TR, 2O) store.
    w12 = w12_ref[...]
    out = b12_ref[...]
    for i in range(4):
        out = out + _dot(att[i], w12[i * H:(i + 1) * H, :])
    o_ref[...] = out.astype(o_ref.dtype)


def attention_fc(e_gru_gcn, e_gcn_gru, e_gcn, e_gru, params, row_block=512):
    """Inputs: four (R, H) slot matrices in the PyTorch cat order
    [gru_gcn, gcn_gru, gcn, gru].  Returns (out1, out2), each (R, O)."""
    R, H = e_gcn_gru.shape
    O = params["w1"].shape[0]
    # Aim for >=2 grid steps (v7x has two TensorCores); TR a multiple of 8.
    tr = ((pl.cdiv(R, 2) + 7) // 8) * 8
    TR = max(8, min(row_block, tr, ((R + 7) // 8) * 8))
    n_chunks = pl.cdiv(R, TR)

    row_spec = pl.BlockSpec((TR, H), lambda r: (r, 0))

    def full(shape):
        return pl.BlockSpec(shape, lambda r: (0, 0))

    wkqv_t = jnp.concatenate(
        [params["wk"].T, params["wq"].T, params["wv"].T], axis=1)       # (H, 3H)
    bkqv = jnp.concatenate(
        [params["bk"], params["bq"], params["bv"]]).reshape(1, 3 * H)
    w12_t = jnp.concatenate([params["w1"].T, params["w2"].T], axis=1)   # (4H, 2O)
    b12 = jnp.concatenate([params["b1"], params["b2"]]).reshape(1, 2 * O)

    out = pl.pallas_call(
        _att_fc_kernel,
        out_shape=jax.ShapeDtypeStruct((R, 2 * O), jnp.float32),
        grid_spec=pltpu.PrefetchScalarGridSpec(
            num_scalar_prefetch=0,
            grid=(n_chunks,),
            in_specs=[row_spec, row_spec, row_spec, row_spec,
                      full((H, 3 * H)), full((1, 3 * H)),
                      full((4 * H, 2 * O)), full((1, 2 * O))],
            out_specs=pl.BlockSpec((TR, 2 * O), lambda r: (r, 0)),
        ),
        compiler_params=pltpu.CompilerParams(dimension_semantics=("parallel",)),
    )(e_gru_gcn, e_gcn_gru, e_gcn, e_gru, wkqv_t, bkqv, w12_t, b12)
    return out[:, :O], out[:, O:]


# ----------------------------------------------------------------------------
# Full ParalleStGcn forward.
# ----------------------------------------------------------------------------
def paralle_stgcn_forward(x, params):
    """x: (B, N, T, Cin) -> (out1, out2), each (B*N, output_size)."""
    B, N, T, Cin = x.shape
    H = params["hidden_size"]
    adj = params["adj"]
    Cout = params["theta_b_t"].shape[1]
    assert Cout == H, "Attention in the module requires out_channels == hidden_size"

    # Single small layout fix of the raw input: time-major rows (t, n).  Every
    # activation after this is produced/consumed in its kernel-native layout.
    x_tm = jnp.transpose(x, (0, 2, 1, 3)).reshape(B, T * N, Cin)

    # gcn_gru branch + plain GCN branch (one fused kernel, grid=(B,)).
    gcn_gru_out, gcn_out = gcn_gru_and_gcn(
        x_tm, adj, params["theta_b_t"], params["theta_c_t"],
        params["gru2_w_ih"], params["gru2_w_hh"],
        params["gru2_b_ih"], params["gru2_b_hh"], H)

    # gru_gcn branch + plain GRU branch (one fused kernel, grid=(B,)).
    gru_gcn_out, gru_out = dual_gru_and_gcn(
        x_tm, adj, params["theta_a_t"],
        params["gru1_w_ih"], params["gru1_w_hh"],
        params["gru1_b_ih"], params["gru1_b_hh"],
        params["gru3_w_ih"], params["gru3_w_hh"],
        params["gru3_b_ih"], params["gru3_b_hh"], H)

    # Fused attention + fc1/fc2 over B*N rows (slot order matches the PyTorch cat).
    R = B * N
    return attention_fc(gru_gcn_out.reshape(R, Cout),
                        gcn_gru_out.reshape(R, H),
                        gcn_out.reshape(R, Cout),
                        gru_out.reshape(R, H), params)


# ----------------------------------------------------------------------------
# Pure-JAX reference (mirrors the PyTorch forward literally) for a sanity check.
# ----------------------------------------------------------------------------
def reference_forward(x, params):
    adj = params["adj"]
    H = params["hidden_size"]
    B, N, T, Cin = x.shape
    Cout = params["theta_b_t"].shape[1]

    with jax.default_matmul_precision("highest"):
        def gcn(x4, theta_t):
            b, n, t, c = x4.shape
            xr = jnp.transpose(x4, (0, 2, 1, 3)).reshape(b * t, n, c)
            y = jnp.maximum(jnp.einsum("nm,bmc,cd->bnd", adj, xr, theta_t), 0.0)
            co = theta_t.shape[1]
            return jnp.transpose(y.reshape(b, t, n, co), (0, 2, 1, 3))   # (b,n,t,co)

        def gru_seq(x3, w_ih, w_hh, b_ih, b_hh):
            hh = w_hh.shape[1]

            def step(h, xt):
                gi = xt @ w_ih.T + b_ih
                gh = h @ w_hh.T + b_hh
                r = jax.nn.sigmoid(gi[:, :hh] + gh[:, :hh])
                z = jax.nn.sigmoid(gi[:, hh:2 * hh] + gh[:, hh:2 * hh])
                nn_ = jnp.tanh(gi[:, 2 * hh:] + r * gh[:, 2 * hh:])
                h_new = (1.0 - z) * nn_ + z * h
                return h_new, h_new

            h0 = jnp.zeros((x3.shape[0], hh), jnp.float32)
            h_last, hs = lax.scan(step, h0, jnp.transpose(x3, (1, 0, 2)))
            return jnp.transpose(hs, (1, 0, 2)), h_last

        x_flat = x.reshape(B * N, T, Cin)

        # gru_gcn unit
        seq1, _ = gru_seq(x_flat, params["gru1_w_ih"], params["gru1_w_hh"],
                          params["gru1_b_ih"], params["gru1_b_hh"])
        gru_gcn_out = gcn(seq1.reshape(B, N, T, H), params["theta_a_t"])[:, :, -1, :]

        # gcn_gru unit
        g = gcn(x, params["theta_b_t"]).reshape(B * N, T, Cout)
        _, h2 = gru_seq(g, params["gru2_w_ih"], params["gru2_w_hh"],
                        params["gru2_b_ih"], params["gru2_b_hh"])
        gcn_gru_out = h2.reshape(B, N, H)

        # gru unit
        _, h3 = gru_seq(x_flat, params["gru3_w_ih"], params["gru3_w_hh"],
                        params["gru3_b_ih"], params["gru3_b_hh"])
        gru_out = h3.reshape(B, N, H)

        # gcn unit
        gcn_out = gcn(x, params["theta_c_t"])[:, :, -1, :]

        # attention (PyTorch cat order: [gru_gcn, gcn_gru, gcn, gru]) + fc1/fc2
        a0 = gru_gcn_out.reshape(-1, Cout)[:, None, :]
        a1 = gcn_gru_out.reshape(-1, H)[:, None, :]
        a2 = gcn_out.reshape(-1, Cout)[:, None, :]
        a3 = gru_out.reshape(-1, H)[:, None, :]
        att_in = jnp.concatenate([a0, a1, a2, a3], axis=1)               # (BN, 4, H)
        k = att_in @ params["wk"].T + params["bk"]
        q = att_in @ params["wq"].T + params["bq"]
        v = att_in @ params["wv"].T + params["bv"]
        s = jax.nn.softmax(jnp.einsum("rih,rjh->rij", k, q), axis=-1)
        att_out = jnp.einsum("rij,rjh->rih", s, v)
        concat = att_out.reshape(-1, 4 * H)
        out1 = concat @ params["w1"].T + params["b1"]
        out2 = concat @ params["w2"].T + params["b2"]
    return out1, out2


if __name__ == "__main__":
    # Small shapes consistent with the module.  The module's Attention forces
    # out_channels == hidden_size.
    B, N, T, Cin = 2, 16, 8, 4
    H = 32
    Cout = H
    O = 32                       # output_size

    key = jax.random.PRNGKey(0)
    ks = jax.random.split(key, 28)

    # Deterministic symmetric-normalized adjacency D^{-1/2}(A+I)D^{-1/2}.
    a = (jax.random.uniform(ks[0], (N, N)) > 0.5).astype(jnp.float32)
    a = jnp.maximum(a, a.T) + jnp.eye(N, dtype=jnp.float32)
    dinv = 1.0 / jnp.sqrt(jnp.sum(a, axis=1))
    adj = a * dinv[:, None] * dinv[None, :]

    def dense(k, shape, scale):
        return scale * jax.random.normal(k, shape, jnp.float32)

    params = {
        "hidden_size": H,
        "adj": adj,
        # GCN Thetas stored transposed (in, out).  (Theta0 of each GCN is unused in
        # the PyTorch forward; dropout=0 is a no-op -> both omitted.)
        "theta_a_t": dense(ks[1], (H, Cout), 0.3),      # gru_gcn.sa_gcn (hidden->out)
        "theta_b_t": dense(ks[2], (Cin, Cout), 0.3),    # gcn_gru.sa_gcn (in->out)
        "theta_c_t": dense(ks[3], (Cin, Cout), 0.3),    # gcn_unit       (in->out)
        # Three independent PyTorch GRUs: weight_ih (3H, in), weight_hh (3H, H),
        # gate order (r, z, n).
        "gru1_w_ih": dense(ks[4], (3 * H, Cin), 0.2),
        "gru1_w_hh": dense(ks[5], (3 * H, H), 0.2),
        "gru1_b_ih": dense(ks[6], (3 * H,), 0.1),
        "gru1_b_hh": dense(ks[7], (3 * H,), 0.1),
        "gru2_w_ih": dense(ks[8], (3 * H, Cout), 0.2),
        "gru2_w_hh": dense(ks[9], (3 * H, H), 0.2),
        "gru2_b_ih": dense(ks[10], (3 * H,), 0.1),
        "gru2_b_hh": dense(ks[11], (3 * H,), 0.1),
        "gru3_w_ih": dense(ks[12], (3 * H, Cin), 0.2),
        "gru3_w_hh": dense(ks[13], (3 * H, H), 0.2),
        "gru3_b_ih": dense(ks[14], (3 * H,), 0.1),
        "gru3_b_hh": dense(ks[15], (3 * H,), 0.1),
        # Attention k/q/v Linears (H -> H) and fc1/fc2 (4H -> O), PyTorch layouts.
        "wk": dense(ks[16], (H, H), 0.2), "bk": dense(ks[17], (H,), 0.1),
        "wq": dense(ks[18], (H, H), 0.2), "bq": dense(ks[19], (H,), 0.1),
        "wv": dense(ks[20], (H, H), 0.2), "bv": dense(ks[21], (H,), 0.1),
        "w1": dense(ks[22], (O, 4 * H), 0.2), "b1": dense(ks[23], (O,), 0.1),
        "w2": dense(ks[24], (O, 4 * H), 0.2), "b2": dense(ks[25], (O,), 0.1),
    }

    x = jax.random.normal(ks[26], (B, N, T, Cin), jnp.float32)

    out1, out2 = paralle_stgcn_forward(x, params)
    out1 = jax.block_until_ready(out1)
    out2 = jax.block_until_ready(out2)
    assert out1.shape == (B * N, O) and out2.shape == (B * N, O), (out1.shape, out2.shape)

    ref1, ref2 = reference_forward(x, params)
    ref1 = jax.block_until_ready(ref1)
    ref2 = jax.block_until_ready(ref2)
    err = max(float(jnp.max(jnp.abs(out1 - ref1))),
              float(jnp.max(jnp.abs(out2 - ref2))))
    assert err < 2e-2, f"max abs error vs reference: {err}"

    print("KERNEL_OK")
</pallas_src>

<mosaic_0001>
module attributes {stable_mosaic.version = 11 : i64} {
  func.func @_gcn_gru_kernel(%arg0: i32, %arg1: memref<1x128x4xf32, #tpu.memory_space<vmem>>, %arg2: memref<16x16xf32, #tpu.memory_space<vmem>>, %arg3: memref<4x32xf32, #tpu.memory_space<vmem>>, %arg4: memref<4x32xf32, #tpu.memory_space<vmem>>, %arg5: memref<32x96xf32, #tpu.memory_space<vmem>>, %arg6: memref<1x96xf32, #tpu.memory_space<vmem>>, %arg7: memref<32x96xf32, #tpu.memory_space<vmem>>, %arg8: memref<1x32xf32, #tpu.memory_space<vmem>>, %arg9: memref<1x16x32xf32, #tpu.memory_space<vmem>>, %arg10: memref<1x16x32xf32, #tpu.memory_space<vmem>>, %arg11: memref<3x128x32xf32, #tpu.memory_space<vmem>>) attributes {dimension_semantics = [#tpu.dimension_semantics<parallel>], iteration_bounds = array<i64: 2>, scalar_prefetch = 0 : i64, scratch_operands = 1 : i64, tpu.core_type = #tpu.core_type<tc>, window_params = [{transform_indices = @transform_0, window_bounds = array<i64: 1, 128, 4>}, {pipeline_mode = #tpu.pipeline_mode<synchronous>, transform_indices = @transform_1, window_bounds = array<i64: 16, 16>}, {pipeline_mode = #tpu.pipeline_mode<synchronous>, transform_indices = @transform_2, window_bounds = array<i64: 4, 32>}, {pipeline_mode = #tpu.pipeline_mode<synchronous>, transform_indices = @transform_3, window_bounds = array<i64: 4, 32>}, {pipeline_mode = #tpu.pipeline_mode<synchronous>, transform_indices = @transform_4, window_bounds = array<i64: 32, 96>}, {pipeline_mode = #tpu.pipeline_mode<synchronous>, transform_indices = @transform_5, window_bounds = array<i64: 1, 96>}, {pipeline_mode = #tpu.pipeline_mode<synchronous>, transform_indices = @transform_6, window_bounds = array<i64: 32, 96>}, {pipeline_mode = #tpu.pipeline_mode<synchronous>, transform_indices = @transform_7, window_bounds = array<i64: 1, 32>}, {transform_indices = @transform_8, window_bounds = array<i64: 1, 16, 32>}, {transform_indices = @transform_9, window_bounds = array<i64: 1, 16, 32>}]} {
    %c0 = arith.constant 0 : index
    %c0_0 = arith.constant 0 : index
    %0 = vector.load %arg2[%c0, %c0_0] : memref<16x16xf32, #tpu.memory_space<vmem>>, vector<16x16xf32>
    %c0_1 = arith.constant 0 : index
    %c0_2 = arith.constant 0 : index
    %c0_3 = arith.constant 0 : index
    %1 = vector.load %arg1[%c0_1, %c0_2, %c0_3] : memref<1x128x4xf32, #tpu.memory_space<vmem>>, vector<1x128x4xf32>
    %2 = vector.shape_cast %1 : vector<1x128x4xf32> to vector<128x4xf32>
    %3 = vector.extract_strided_slice %2 {offsets = [112, 0], sizes = [16, 4], strides = [1, 1]} : vector<128x4xf32> to vector<16x4xf32>
    %c0_4 = arith.constant 0 : index
    %c0_5 = arith.constant 0 : index
    %4 = vector.load %arg4[%c0_4, %c0_5] : memref<4x32xf32, #tpu.memory_space<vmem>>, vector<4x32xf32>
    %cst = arith.constant dense<0.000000e+00> : vector<16x32xf32>
    %5 = tpu.matmul %3, %4, %cst {dimension_numbers = #tpu.dot_dimension_numbers<[1], [0], [0], [1], [0, 0, 1, 1], [], []>} : vector<16x4xf32>, vector<4x32xf32>, vector<16x32xf32> -> vector<16x32xf32>
    %cst_6 = arith.constant dense<0.000000e+00> : vector<16x32xf32>
    %6 = tpu.matmul %0, %5, %cst_6 {dimension_numbers = #tpu.dot_dimension_numbers<[1], [0], [0], [1], [0, 0, 1, 1], [], []>} : vector<16x16xf32>, vector<16x32xf32>, vector<16x32xf32> -> vector<16x32xf32>
    %cst_7 = arith.constant 0.000000e+00 : f32
    %7 = vector.broadcast %cst_7 : f32 to vector<16x32xf32>
    %8 = arith.maximumf %6, %7 : vector<16x32xf32>
    %c0_8 = arith.constant 0 : index
    %c0_9 = arith.constant 0 : index
    %c0_10 = arith.constant 0 : index
    %9 = vector.load %arg10[%c0_8, %c0_9, %c0_10] : memref<1x16x32xf32, #tpu.memory_space<vmem>>, vector<1x16x32xf32>
    %10 = vector.shape_cast %9 : vector<1x16x32xf32> to vector<16x32xf32>
    %11 = vector.shape_cast %8 : vector<16x32xf32> to vector<1x16x32xf32>
    tpu.vector_store %arg10[%c0_8, %c0_9, %c0_10], %11 {strides = array<i32>} : memref<1x16x32xf32, #tpu.memory_space<vmem>>, vector<1x16x32xf32>,
    %c0_11 = arith.constant 0 : index
    %c0_12 = arith.constant 0 : index
    %12 = vector.load %arg3[%c0_11, %c0_12] : memref<4x32xf32, #tpu.memory_space<vmem>>, vector<4x32xf32>
    %cst_13 = arith.constant dense<0.000000e+00> : vector<128x32xf32>
    %13 = tpu.matmul %2, %12, %cst_13 {dimension_numbers = #tpu.dot_dimension_numbers<[1], [0], [0], [1], [0, 0, 1, 1], [], []>} : vector<128x4xf32>, vector<4x32xf32>, vector<128x32xf32> -> vector<128x32xf32>
    %14 = vector.extract_strided_slice %13 {offsets = [0, 0], sizes = [16, 32], strides = [1, 1]} : vector<128x32xf32> to vector<16x32xf32>
    %cst_14 = arith.constant dense<0.000000e+00> : vector<16x32xf32>
    %15 = tpu.matmul %0, %14, %cst_14 {dimension_numbers = #tpu.dot_dimension_numbers<[1], [0], [0], [1], [0, 0, 1, 1], [], []>} : vector<16x16xf32>, vector<16x32xf32>, vector<16x32xf32> -> vector<16x32xf32>
    %cst_15 = arith.constant 0.000000e+00 : f32
    %16 = vector.broadcast %cst_15 : f32 to vector<16x32xf32>
    %17 = arith.maximumf %15, %16 : vector<16x32xf32>
    %18 = vector.extract_strided_slice %13 {offsets = [16, 0], sizes = [16, 32], strides = [1, 1]} : vector<128x32xf32> to vector<16x32xf32>
    %cst_16 = arith.constant dense<0.000000e+00> : vector<16x32xf32>
    %19 = tpu.matmul %0, %18, %cst_16 {dimension_numbers = #tpu.dot_dimension_numbers<[1], [0], [0], [1], [0, 0, 1, 1], [], []>} : vector<16x16xf32>, vector<16x32xf32>, vector<16x32xf32> -> vector<16x32xf32>
    %cst_17 = arith.constant 0.000000e+00 : f32
    %20 = vector.broadcast %cst_17 : f32 to vector<16x32xf32>
    %21 = arith.maximumf %19, %20 : vector<16x32xf32>
    %22 = vector.extract_strided_slice %13 {offsets = [32, 0], sizes = [16, 32], strides = [1, 1]} : vector<128x32xf32> to vector<16x32xf32>
    %cst_18 = arith.constant dense<0.000000e+00> : vector<16x32xf32>
    %23 = tpu.matmul %0, %22, %cst_18 {dimension_numbers = #tpu.dot_dimension_numbers<[1], [0], [0], [1], [0, 0, 1, 1], [], []>} : vector<16x16xf32>, vector<16x32xf32>, vector<16x32xf32> -> vector<16x32xf32>
    %cst_19 = arith.constant 0.000000e+00 : f32
    %24 = vector.broadcast %cst_19 : f32 to vector<16x32xf32>
    %25 = arith.maximumf %23, %24 : vector<16x32xf32>
    %26 = vector.extract_strided_slice %13 {offsets = [48, 0], sizes = [16, 32], strides = [1, 1]} : vector<128x32xf32> to vector<16x32xf32>
    %cst_20 = arith.constant dense<0.000000e+00> : vector<16x32xf32>
    %27 = tpu.matmul %0, %26, %cst_20 {dimension_numbers = #tpu.dot_dimension_numbers<[1], [0], [0], [1], [0, 0, 1, 1], [], []>} : vector<16x16xf32>, vector<16x32xf32>, vector<16x32xf32> -> vector<16x32xf32>
    %cst_21 = arith.constant 0.000000e+00 : f32
    %28 = vector.broadcast %cst_21 : f32 to vector<16x32xf32>
    %29 = arith.maximumf %27, %28 : vector<16x32xf32>
    %30 = vector.extract_strided_slice %13 {offsets = [64, 0], sizes = [16, 32], strides = [1, 1]} : vector<128x32xf32> to vector<16x32xf32>
    %cst_22 = arith.constant dense<0.000000e+00> : vector<16x32xf32>
    %31 = tpu.matmul %0, %30, %cst_22 {dimension_numbers = #tpu.dot_dimension_numbers<[1], [0], [0], [1], [0, 0, 1, 1], [], []>} : vector<16x16xf32>, vector<16x32xf32>, vector<16x32xf32> -> vector<16x32xf32>
    %cst_23 = arith.constant 0.000000e+00 : f32
    %32 = vector.broadcast %cst_23 : f32 to vector<16x32xf32>
    %33 = arith.maximumf %31, %32 : vector<16x32xf32>
    %34 = vector.extract_strided_slice %13 {offsets = [80, 0], sizes = [16, 32], strides = [1, 1]} : vector<128x32xf32> to vector<16x32xf32>
    %cst_24 = arith.constant dense<0.000000e+00> : vector<16x32xf32>
    %35 = tpu.matmul %0, %34, %cst_24 {dimension_numbers = #tpu.dot_dimension_numbers<[1], [0], [0], [1], [0, 0, 1, 1], [], []>} : vector<16x16xf32>, vector<16x32xf32>, vector<16x32xf32> -> vector<16x32xf32>
    %cst_25 = arith.constant 0.000000e+00 : f32
    %36 = vector.broadcast %cst_25 : f32 to vector<16x32xf32>
    %37 = arith.maximumf %35, %36 : vector<16x32xf32>
    %38 = vector.extract_strided_slice %13 {offsets = [96, 0], sizes = [16, 32], strides = [1, 1]} : vector<128x32xf32> to vector<16x32xf32>
    %cst_26 = arith.constant dense<0.000000e+00> : vector<16x32xf32>
    %39 = tpu.matmul %0, %38, %cst_26 {dimension_numbers = #tpu.dot_dimension_numbers<[1], [0], [0], [1], [0, 0, 1, 1], [], []>} : vector<16x16xf32>, vector<16x32xf32>, vector<16x32xf32> -> vector<16x32xf32>
    %cst_27 = arith.constant 0.000000e+00 : f32
    %40 = vector.broadcast %cst_27 : f32 to vector<16x32xf32>
    %41 = arith.maximumf %39, %40 : vector<16x32xf32>
    %42 = vector.extract_strided_slice %13 {offsets = [112, 0], sizes = [16, 32], strides = [1, 1]} : vector<128x32xf32> to vector<16x32xf32>
    %cst_28 = arith.constant dense<0.000000e+00> : vector<16x32xf32>
    %43 = tpu.matmul %0, %42, %cst_28 {dimension_numbers = #tpu.dot_dimension_numbers<[1], [0], [0], [1], [0, 0, 1, 1], [], []>} : vector<16x16xf32>, vector<16x32xf32>, vector<16x32xf32> -> vector<16x32xf32>
    %cst_29 = arith.constant 0.000000e+00 : f32
    %44 = vector.broadcast %cst_29 : f32 to vector<16x32xf32>
    %45 = arith.maximumf %43, %44 : vector<16x32xf32>
    %46 = tpu.concatenate %17, %21, %25, %29, %33, %37, %41, %45 in 0 : vector<16x32xf32>, vector<16x32xf32>, vector<16x32xf32>, vector<16x32xf32>, vector<16x32xf32>, vector<16x32xf32>, vector<16x32xf32>, vector<16x32xf32> -> vector<128x32xf32>
    %c0_30 = arith.constant 0 : index
    %c0_31 = arith.constant 0 : index
    %47 = vector.load %arg5[%c0_30, %c0_31] : memref<32x96xf32, #tpu.memory_space<vmem>>, vector<32x96xf32>
    %cst_32 = arith.constant dense<0.000000e+00> : vector<128x96xf32>
    %48 = tpu.matmul %46, %47, %cst_32 {dimension_numbers = #tpu.dot_dimension_numbers<[1], [0], [0], [1], [0, 0, 1, 1], [], []>} : vector<128x32xf32>, vector<32x96xf32>, vector<128x96xf32> -> vector<128x96xf32>
    %c0_33 = arith.constant 0 : index
    %c0_34 = arith.constant 0 : index
    %49 = vector.load %arg6[%c0_33, %c0_34] : memref<1x96xf32, #tpu.memory_space<vmem>>, vector<1x96xf32>
    %50 = vector.broadcast %49 : vector<1x96xf32> to vector<128x96xf32>
    %51 = arith.addf %48, %50 : vector<128x96xf32>
    %52 = vector.extract_strided_slice %51 {offsets = [0, 0], sizes = [128, 32], strides = [1, 1]} : vector<128x96xf32> to vector<128x32xf32>
    %c0_35 = arith.constant 0 : index
    %c0_36 = arith.constant 0 : index
    %c0_37 = arith.constant 0 : index
    %53 = vector.load %arg11[%c0_35, %c0_36, %c0_37] : memref<3x128x32xf32, #tpu.memory_space<vmem>>, vector<1x128x32xf32>
    %54 = vector.shape_cast %53 : vector<1x128x32xf32> to vector<128x32xf32>
    %55 = vector.shape_cast %52 : vector<128x32xf32> to vector<1x128x32xf32>
    tpu.vector_store %arg11[%c0_35, %c0_36, %c0_37], %55 {strides = array<i32>} : memref<3x128x32xf32, #tpu.memory_space<vmem>>, vector<1x128x32xf32>,
    %56 = vector.extract_strided_slice %51 {offsets = [0, 32], sizes = [128, 32], strides = [1, 1]} : vector<128x96xf32> to vector<128x32xf32>
    %c1 = arith.constant 1 : index
    %c0_38 = arith.constant 0 : index
    %c0_39 = arith.constant 0 : index
    %57 = vector.load %arg11[%c1, %c0_38, %c0_39] : memref<3x128x32xf32, #tpu.memory_space<vmem>>, vector<1x128x32xf32>
    %58 = vector.shape_cast %57 : vector<1x128x32xf32> to vector<128x32xf32>
    %59 = vector.shape_cast %56 : vector<128x32xf32> to vector<1x128x32xf32>
    tpu.vector_store %arg11[%c1, %c0_38, %c0_39], %59 {strides = array<i32>} : memref<3x128x32xf32, #tpu.memory_space<vmem>>, vector<1x128x32xf32>,
    %60 = vector.extract_strided_slice %51 {offsets = [0, 64], sizes = [128, 32], strides = [1, 1]} : vector<128x96xf32> to vector<128x32xf32>
    %c2 = arith.constant 2 : index
    %c0_40 = arith.constant 0 : index
    %c0_41 = arith.constant 0 : index
    %61 = vector.load %arg11[%c2, %c0_40, %c0_41] : memref<3x128x32xf32, #tpu.memory_space<vmem>>, vector<1x128x32xf32>
    %62 = vector.shape_cast %61 : vector<1x128x32xf32> to vector<128x32xf32>
    %63 = vector.shape_cast %60 : vector<128x32xf32> to vector<1x128x32xf32>
    tpu.vector_store %arg11[%c2, %c0_40, %c0_41], %63 {strides = array<i32>} : memref<3x128x32xf32, #tpu.memory_space<vmem>>, vector<1x128x32xf32>,
    %c0_42 = arith.constant 0 : index
    %c0_43 = arith.constant 0 : index
    %64 = vector.load %arg7[%c0_42, %c0_43] : memref<32x96xf32, #tpu.memory_space<vmem>>, vector<32x96xf32>
    %65 = vector.extract_strided_slice %64 {offsets = [0, 0], sizes = [32, 32], strides = [1, 1]} : vector<32x96xf32> to vector<32x32xf32>
    %66 = vector.extract_strided_slice %64 {offsets = [0, 32], sizes = [32, 32], strides = [1, 1]} : vector<32x96xf32> to vector<32x32xf32>
    %67 = vector.extract_strided_slice %64 {offsets = [0, 64], sizes = [32, 32], strides = [1, 1]} : vector<32x96xf32> to vector<32x32xf32>
    %c0_44 = arith.constant 0 : index
    %c0_45 = arith.constant 0 : index
    %68 = vector.load %arg8[%c0_44, %c0_45] : memref<1x32xf32, #tpu.memory_space<vmem>>, vector<1x32xf32>
    %cst_46 = arith.constant 0.000000e+00 : f32
    %69 = vector.broadcast %cst_46 : f32 to vector<16x32xf32>
    %cst_47 = arith.constant dense<0.000000e+00> : vector<16x32xf32>
    %70 = tpu.matmul %69, %65, %cst_47 {dimension_numbers = #tpu.dot_dimension_numbers<[1], [0], [0], [1], [0, 0, 1, 1], [], []>} : vector<16x32xf32>, vector<32x32xf32>, vector<16x32xf32> -> vector<16x32xf32>
    %cst_48 = arith.constant dense<0.000000e+00> : vector<16x32xf32>
    %71 = tpu.matmul %69, %66, %cst_48 {dimension_numbers = #tpu.dot_dimension_numbers<[1], [0], [0], [1], [0, 0, 1, 1], [], []>} : vector<16x32xf32>, vector<32x32xf32>, vector<16x32xf32> -> vector<16x32xf32>
    %cst_49 = arith.constant dense<0.000000e+00> : vector<16x32xf32>
    %72 = tpu.matmul %69, %67, %cst_49 {dimension_numbers = #tpu.dot_dimension_numbers<[1], [0], [0], [1], [0, 0, 1, 1], [], []>} : vector<16x32xf32>, vector<32x32xf32>, vector<16x32xf32> -> vector<16x32xf32>
    %73 = vector.broadcast %68 : vector<1x32xf32> to vector<16x32xf32>
    %74 = arith.addf %72, %73 : vector<16x32xf32>
    %c0_50 = arith.constant 0 : index
    %c0_51 = arith.constant 0 : index
    %c0_52 = arith.constant 0 : index
    %75 = vector.load %arg11[%c0_50, %c0_51, %c0_52] : memref<3x128x32xf32, #tpu.memory_space<vmem>>, vector<1x16x32xf32>
    %76 = vector.shape_cast %75 : vector<1x16x32xf32> to vector<16x32xf32>
    %77 = arith.addf %76, %70 : vector<16x32xf32>
    %78 = arith.negf %77 : vector<16x32xf32>
    %79 = math.exp %78 : vector<16x32xf32>
    %cst_53 = arith.constant 1.000000e+00 : f32
    %80 = vector.broadcast %cst_53 : f32 to vector<16x32xf32>
    %81 = arith.addf %80, %79 : vector<16x32xf32>
    %82 = arith.divf %80, %81 : vector<16x32xf32>
    %c1_54 = arith.constant 1 : index
    %c0_55 = arith.constant 0 : index
    %c0_56 = arith.constant 0 : index
    %83 = vector.load %arg11[%c1_54, %c0_55, %c0_56] : memref<3x128x32xf32, #tpu.memory_space<vmem>>, vector<1x16x32xf32>
    %84 = vector.shape_cast %83 : vector<1x16x32xf32> to vector<16x32xf32>
    %85 = arith.addf %84, %71 : vector<16x32xf32>
    %86 = arith.negf %85 : vector<16x32xf32>
    %87 = math.exp %86 : vector<16x32xf32>
    %cst_57 = arith.constant 1.000000e+00 : f32
    %88 = vector.broadcast %cst_57 : f32 to vector<16x32xf32>
    %89 = arith.addf %88, %87 : vector<16x32xf32>
    %90 = arith.divf %88, %89 : vector<16x32xf32>
    %c2_58 = arith.constant 2 : index
    %c0_59 = arith.constant 0 : index
    %c0_60 = arith.constant 0 : index
    %91 = vector.load %arg11[%c2_58, %c0_59, %c0_60] : memref<3x128x32xf32, #tpu.memory_space<vmem>>, vector<1x16x32xf32>
    %92 = vector.shape_cast %91 : vector<1x16x32xf32> to vector<16x32xf32>
    %93 = arith.mulf %82, %74 : vector<16x32xf32>
    %94 = arith.addf %92, %93 : vector<16x32xf32>
    %95 = math.tanh %94 : vector<16x32xf32>
    %96 = arith.subf %69, %95 : vector<16x32xf32>
    %97 = arith.mulf %90, %96 : vector<16x32xf32>
    %98 = arith.addf %95, %97 : vector<16x32xf32>
    %cst_61 = arith.constant dense<0.000000e+00> : vector<16x32xf32>
    %99 = tpu.matmul %98, %65, %cst_61 {dimension_numbers = #tpu.dot_dimension_numbers<[1], [0], [0], [1], [0, 0, 1, 1], [], []>} : vector<16x32xf32>, vector<32x32xf32>, vector<16x32xf32> -> vector<16x32xf32>
    %cst_62 = arith.constant dense<0.000000e+00> : vector<16x32xf32>
    %100 = tpu.matmul %98, %66, %cst_62 {dimension_numbers = #tpu.dot_dimension_numbers<[1], [0], [0], [1], [0, 0, 1, 1], [], []>} : vector<16x32xf32>, vector<32x32xf32>, vector<16x32xf32> -> vector<16x32xf32>
    %cst_63 = arith.constant dense<0.000000e+00> : vector<16x32xf32>
    %101 = tpu.matmul %98, %67, %cst_63 {dimension_numbers = #tpu.dot_dimension_numbers<[1], [0], [0], [1], [0, 0, 1, 1], [], []>} : vector<16x32xf32>, vector<32x32xf32>, vector<16x32xf32> -> vector<16x32xf32>
    %102 = vector.broadcast %68 : vector<1x32xf32> to vector<16x32xf32>
    %103 = arith.addf %101, %102 : vector<16x32xf32>
    %c0_64 = arith.constant 0 : index
    %c16 = arith.constant 16 : index
    %c0_65 = arith.constant 0 : index
    %104 = vector.load %arg11[%c0_64, %c16, %c0_65] : memref<3x128x32xf32, #tpu.memory_space<vmem>>, vector<1x16x32xf32>
    %105 = vector.shape_cast %104 : vector<1x16x32xf32> to vector<16x32xf32>
    %106 = arith.addf %105, %99 : vector<16x32xf32>
    %107 = arith.negf %106 : vector<16x32xf32>
    %108 = math.exp %107 : vector<16x32xf32>
    %cst_66 = arith.constant 1.000000e+00 : f32
    %109 = vector.broadcast %cst_66 : f32 to vector<16x32xf32>
    %110 = arith.addf %109, %108 : vector<16x32xf32>
    %111 = arith.divf %109, %110 : vector<16x32xf32>
    %c1_67 = arith.constant 1 : index
    %c16_68 = arith.constant 16 : index
    %c0_69 = arith.constant 0 : index
    %112 = vector.load %arg11[%c1_67, %c16_68, %c0_69] : memref<3x128x32xf32, #tpu.memory_space<vmem>>, vector<1x16x32xf32>
    %113 = vector.shape_cast %112 : vector<1x16x32xf32> to vector<16x32xf32>
    %114 = arith.addf %113, %100 : vector<16x32xf32>
    %115 = arith.negf %114 : vector<16x32xf32>
    %116 = math.exp %115 : vector<16x32xf32>
    %cst_70 = arith.constant 1.000000e+00 : f32
    %117 = vector.broadcast %cst_70 : f32 to vector<16x32xf32>
    %118 = arith.addf %117, %116 : vector<16x32xf32>
    %119 = arith.divf %117, %118 : vector<16x32xf32>
    %c2_71 = arith.constant 2 : index
    %c16_72 = arith.constant 16 : index
    %c0_73 = arith.constant 0 : index
    %120 = vector.load %arg11[%c2_71, %c16_72, %c0_73] : memref<3x128x32xf32, #tpu.memory_space<vmem>>, vector<1x16x32xf32>
    %121 = vector.shape_cast %120 : vector<1x16x32xf32> to vector<16x32xf32>
    %122 = arith.mulf %111, %103 : vector<16x32xf32>
    %123 = arith.addf %121, %122 : vector<16x32xf32>
    %124 = math.tanh %123 : vector<16x32xf32>
    %125 = arith.subf %98, %124 : vector<16x32xf32>
    %126 = arith.mulf %119, %125 : vector<16x32xf32>
    %127 = arith.addf %124, %126 : vector<16x32xf32>
    %cst_74 = arith.constant dense<0.000000e+00> : vector<16x32xf32>
    %128 = tpu.matmul %127, %65, %cst_74 {dimension_numbers = #tpu.dot_dimension_numbers<[1], [0], [0], [1], [0, 0, 1, 1], [], []>} : vector<16x32xf32>, vector<32x32xf32>, vector<16x32xf32> -> vector<16x32xf32>
    %cst_75 = arith.constant dense<0.000000e+00> : vector<16x32xf32>
    %129 = tpu.matmul %127, %66, %cst_75 {dimension_numbers = #tpu.dot_dimension_numbers<[1], [0], [0], [1], [0, 0, 1, 1], [], []>} : vector<16x32xf32>, vector<32x32xf32>, vector<16x32xf32> -> vector<16x32xf32>
    %cst_76 = arith.constant dense<0.000000e+00> : vector<16x32xf32>
    %130 = tpu.matmul %127, %67, %cst_76 {dimension_numbers = #tpu.dot_dimension_numbers<[1], [0], [0], [1], [0, 0, 1, 1], [], []>} : vector<16x32xf32>, vector<32x32xf32>, vector<16x32xf32> -> vector<16x32xf32>
    %131 = vector.broadcast %68 : vector<1x32xf32> to vector<16x32xf32>
    %132 = arith.addf %130, %131 : vector<16x32xf32>
    %c0_77 = arith.constant 0 : index
    %c32 = arith.constant 32 : index
    %c0_78 = arith.constant 0 : index
    %133 = vector.load %arg11[%c0_77, %c32, %c0_78] : memref<3x128x32xf32, #tpu.memory_space<vmem>>, vector<1x16x32xf32>
    %134 = vector.shape_cast %133 : vector<1x16x32xf32> to vector<16x32xf32>
    %135 = arith.addf %134, %128 : vector<16x32xf32>
    %136 = arith.negf %135 : vector<16x32xf32>
    %137 = math.exp %136 : vector<16x32xf32>
    %cst_79 = arith.constant 1.000000e+00 : f32
    %138 = vector.broadcast %cst_79 : f32 to vector<16x32xf32>
    %139 = arith.addf %138, %137 : vector<16x32xf32>
    %140 = arith.divf %138, %139 : vector<16x32xf32>
    %c1_80 = arith.constant 1 : index
    %c32_81 = arith.constant 32 : index
    %c0_82 = arith.constant 0 : index
    %141 = vector.load %arg11[%c1_80, %c32_81, %c0_82] : memref<3x128x32xf32, #tpu.memory_space<vmem>>, vector<1x16x32xf32>
    %142 = vector.shape_cast %141 : vector<1x16x32xf32> to vector<16x32xf32>
    %143 = arith.addf %142, %129 : vector<16x32xf32>
    %144 = arith.negf %143 : vector<16x32xf32>
    %145 = math.exp %144 : vector<16x32xf32>
    %cst_83 = arith.constant 1.000000e+00 : f32
    %146 = vector.broadcast %cst_83 : f32 to vector<16x32xf32>
    %147 = arith.addf %146, %145 : vector<16x32xf32>
    %148 = arith.divf %146, %147 : vector<16x32xf32>
    %c2_84 = arith.constant 2 : index
    %c32_85 = arith.constant 32 : index
    %c0_86 = arith.constant 0 : index
    %149 = vector.load %arg11[%c2_84, %c32_85, %c0_86] : memref<3x128x32xf32, #tpu.memory_space<vmem>>, vector<1x16x32xf32>
    %150 = vector.shape_cast %149 : vector<1x16x32xf32> to vector<16x32xf32>
    %151 = arith.mulf %140, %132 : vector<16x32xf32>
    %152 = arith.addf %150, %151 : vector<16x32xf32>
    %153 = math.tanh %152 : vector<16x32xf32>
    %154 = arith.subf %127, %153 : vector<16x32xf32>
    %155 = arith.mulf %148, %154 : vector<16x32xf32>
    %156 = arith.addf %153, %155 : vector<16x32xf32>
    %cst_87 = arith.constant dense<0.000000e+00> : vector<16x32xf32>
    %157 = tpu.matmul %156, %65, %cst_87 {dimension_numbers = #tpu.dot_dimension_numbers<[1], [0], [0], [1], [0, 0, 1, 1], [], []>} : vector<16x32xf32>, vector<32x32xf32>, vector<16x32xf32> -> vector<16x32xf32>
    %cst_88 = arith.constant dense<0.000000e+00> : vector<16x32xf32>
    %158 = tpu.matmul %156, %66, %cst_88 {dimension_numbers = #tpu.dot_dimension_numbers<[1], [0], [0], [1], [0, 0, 1, 1], [], []>} : vector<16x32xf32>, vector<32x32xf32>, vector<16x32xf32> -> vector<16x32xf32>
    %cst_89 = arith.constant dense<0.000000e+00> : vector<16x32xf32>
    %159 = tpu.matmul %156, %67, %cst_89 {dimension_numbers = #tpu.dot_dimension_numbers<[1], [0], [0], [1], [0, 0, 1, 1], [], []>} : vector<16x32xf32>, vector<32x32xf32>, vector<16x32xf32> -> vector<16x32xf32>
    %160 = vector.broadcast %68 : vector<1x32xf32> to vector<16x32xf32>
    %161 = arith.addf %159, %160 : vector<16x32xf32>
    %c0_90 = arith.constant 0 : index
    %c48 = arith.constant 48 : index
    %c0_91 = arith.constant 0 : index
    %162 = vector.load %arg11[%c0_90, %c48, %c0_91] : memref<3x128x32xf32, #tpu.memory_space<vmem>>, vector<1x16x32xf32>
    %163 = vector.shape_cast %162 : vector<1x16x32xf32> to vector<16x32xf32>
    %164 = arith.addf %163, %157 : vector<16x32xf32>
    %165 = arith.negf %164 : vector<16x32xf32>
    %166 = math.exp %165 : vector<16x32xf32>
    %cst_92 = arith.constant 1.000000e+00 : f32
    %167 = vector.broadcast %cst_92 : f32 to vector<16x32xf32>
    %168 = arith.addf %167, %166 : vector<16x32xf32>
    %169 = arith.divf %167, %168 : vector<16x32xf32>
    %c1_93 = arith.constant 1 : index
    %c48_94 = arith.constant 48 : index
    %c0_95 = arith.constant 0 : index
    %170 = vector.load %arg11[%c1_93, %c48_94, %c0_95] : memref<3x128x32xf32, #tpu.memory_space<vmem>>, vector<1x16x32xf32>
    %171 = vector.shape_cast %170 : vector<1x16x32xf32> to vector<16x32xf32>
    %172 = arith.addf %171, %158 : vector<16x32xf32>
    %173 = arith.negf %172 : vector<16x32xf32>
    %174 = math.exp %173 : vector<16x32xf32>
    %cst_96 = arith.constant 1.000000e+00 : f32
    %175 = vector.broadcast %cst_96 : f32 to vector<16x32xf32>
    %176 = arith.addf %175, %174 : vector<16x32xf32>
    %177 = arith.divf %175, %176 : vector<16x32xf32>
    %c2_97 = arith.constant 2 : index
    %c48_98 = arith.constant 48 : index
    %c0_99 = arith.constant 0 : index
    %178 = vector.load %arg11[%c2_97, %c48_98, %c0_99] : memref<3x128x32xf32, #tpu.memory_space<vmem>>, vector<1x16x32xf32>
    %179 = vector.shape_cast %178 : vector<1x16x32xf32> to vector<16x32xf32>
    %180 = arith.mulf %169, %161 : vector<16x32xf32>
    %181 = arith.addf %179, %180 : vector<16x32xf32>
    %182 = math.tanh %181 : vector<16x32xf32>
    %183 = arith.subf %156, %182 : vector<16x32xf32>
    %184 = arith.mulf %177, %183 : vector<16x32xf32>
    %185 = arith.addf %182, %184 : vector<16x32xf32>
    %cst_100 = arith.constant dense<0.000000e+00> : vector<16x32xf32>
    %186 = tpu.matmul %185, %65, %cst_100 {dimension_numbers = #tpu.dot_dimension_numbers<[1], [0], [0], [1], [0, 0, 1, 1], [], []>} : vector<16x32xf32>, vector<32x32xf32>, vector<16x32xf32> -> vector<16x32xf32>
    %cst_101 = arith.constant dense<0.000000e+00> : vector<16x32xf32>
    %187 = tpu.matmul %185, %66, %cst_101 {dimension_numbers = #tpu.dot_dimension_numbers<[1], [0], [0], [1], [0, 0, 1, 1], [], []>} : vector<16x32xf32>, vector<32x32xf32>, vector<16x32xf32> -> vector<16x32xf32>
    %cst_102 = arith.constant dense<0.000000e+00> : vector<16x32xf32>
    %188 = tpu.matmul %185, %67, %cst_102 {dimension_numbers = #tpu.dot_dimension_numbers<[1], [0], [0], [1], [0, 0, 1, 1], [], []>} : vector<16x32xf32>, vector<32x32xf32>, vector<16x32xf32> -> vector<16x32xf32>
    %189 = vector.broadcast %68 : vector<1x32xf32> to vector<16x32xf32>
    %190 = arith.addf %188, %189 : vector<16x32xf32>
    %c0_103 = arith.constant 0 : index
    %c64 = arith.constant 64 : index
    %c0_104 = arith.constant 0 : index
    %191 = vector.load %arg11[%c0_103, %c64, %c0_104] : memref<3x128x32xf32, #tpu.memory_space<vmem>>, vector<1x16x32xf32>
    %192 = vector.shape_cast %191 : vector<1x16x32xf32> to vector<16x32xf32>
    %193 = arith.addf %192, %186 : vector<16x32xf32>
    %194 = arith.negf %193 : vector<16x32xf32>
    %195 = math.exp %194 : vector<16x32xf32>
    %cst_105 = arith.constant 1.000000e+00 : f32
    %196 = vector.broadcast %cst_105 : f32 to vector<16x32xf32>
    %197 = arith.addf %196, %195 : vector<16x32xf32>
    %198 = arith.divf %196, %197 : vector<16x32xf32>
    %c1_106 = arith.constant 1 : index
    %c64_107 = arith.constant 64 : index
    %c0_108 = arith.constant 0 : index
    %199 = vector.load %arg11[%c1_106, %c64_107, %c0_108] : memref<3x128x32xf32, #tpu.memory_space<vmem>>, vector<1x16x32xf32>
    %200 = vector.shape_cast %199 : vector<1x16x32xf32> to vector<16x32xf32>
    %201 = arith.addf %200, %187 : vector<16x32xf32>
    %202 = arith.negf %201 : vector<16x32xf32>
    %203 = math.exp %202 : vector<16x32xf32>
    %cst_109 = arith.constant 1.000000e+00 : f32
    %204 = vector.broadcast %cst_109 : f32 to vector<16x32xf32>
    %205 = arith.addf %204, %203 : vector<16x32xf32>
    %206 = arith.divf %204, %205 : vector<16x32xf32>
    %c2_110 = arith.constant 2 : index
    %c64_111 = arith.constant 64 : index
    %c0_112 = arith.constant 0 : index
    %207 = vector.load %arg11[%c2_110, %c64_111, %c0_112] : memref<3x128x32xf32, #tpu.memory_space<vmem>>, vector<1x16x32xf32>
    %208 = vector.shape_cast %207 : vector<1x16x32xf32> to vector<16x32xf32>
    %209 = arith.mulf %198, %190 : vector<16x32xf32>
    %210 = arith.addf %208, %209 : vector<16x32xf32>
    %211 = math.tanh %210 : vector<16x32xf32>
    %212 = arith.subf %185, %211 : vector<16x32xf32>
    %213 = arith.mulf %206, %212 : vector<16x32xf32>
    %214 = arith.addf %211, %213 : vector<16x32xf32>
    %cst_113 = arith.constant dense<0.000000e+00> : vector<16x32xf32>
    %215 = tpu.matmul %214, %65, %cst_113 {dimension_numbers = #tpu.dot_dimension_numbers<[1], [0], [0], [1], [0, 0, 1, 1], [], []>} : vector<16x32xf32>, vector<32x32xf32>, vector<16x32xf32> -> vector<16x32xf32>
    %cst_114 = arith.constant dense<0.000000e+00> : vector<16x32xf32>
    %216 = tpu.matmul %214, %66, %cst_114 {dimension_numbers = #tpu.dot_dimension_numbers<[1], [0], [0], [1], [0, 0, 1, 1], [], []>} : vector<16x32xf32>, vector<32x32xf32>, vector<16x32xf32> -> vector<16x32xf32>
    %cst_115 = arith.constant dense<0.000000e+00> : vector<16x32xf32>
    %217 = tpu.matmul %214, %67, %cst_115 {dimension_numbers = #tpu.dot_dimension_numbers<[1], [0], [0], [1], [0, 0, 1, 1], [], []>} : vector<16x32xf32>, vector<32x32xf32>, vector<16x32xf32> -> vector<16x32xf32>
    %218 = vector.broadcast %68 : vector<1x32xf32> to vector<16x32xf32>
    %219 = arith.addf %217, %218 : vector<16x32xf32>
    %c0_116 = arith.constant 0 : index
    %c80 = arith.constant 80 : index
    %c0_117 = arith.constant 0 : index
    %220 = vector.load %arg11[%c0_116, %c80, %c0_117] : memref<3x128x32xf32, #tpu.memory_space<vmem>>, vector<1x16x32xf32>
    %221 = vector.shape_cast %220 : vector<1x16x32xf32> to vector<16x32xf32>
    %222 = arith.addf %221, %215 : vector<16x32xf32>
    %223 = arith.negf %222 : vector<16x32xf32>
    %224 = math.exp %223 : vector<16x32xf32>
    %cst_118 = arith.constant 1.000000e+00 : f32
    %225 = vector.broadcast %cst_118 : f32 to vector<16x32xf32>
    %226 = arith.addf %225, %224 : vector<16x32xf32>
    %227 = arith.divf %225, %226 : vector<16x32xf32>
    %c1_119 = arith.constant 1 : index
    %c80_120 = arith.constant 80 : index
    %c0_121 = arith.constant 0 : index
    %228 = vector.load %arg11[%c1_119, %c80_120, %c0_121] : memref<3x128x32xf32, #tpu.memory_space<vmem>>, vector<1x16x32xf32>
    %229 = vector.shape_cast %228 : vector<1x16x32xf32> to vector<16x32xf32>
    %230 = arith.addf %229, %216 : vector<16x32xf32>
    %231 = arith.negf %230 : vector<16x32xf32>
    %232 = math.exp %231 : vector<16x32xf32>
    %cst_122 = arith.constant 1.000000e+00 : f32
    %233 = vector.broadcast %cst_122 : f32 to vector<16x32xf32>
    %234 = arith.addf %233, %232 : vector<16x32xf32>
    %235 = arith.divf %233, %234 : vector<16x32xf32>
    %c2_123 = arith.constant 2 : index
    %c80_124 = arith.constant 80 : index
    %c0_125 = arith.constant 0 : index
    %236 = vector.load %arg11[%c2_123, %c80_124, %c0_125] : memref<3x128x32xf32, #tpu.memory_space<vmem>>, vector<1x16x32xf32>
    %237 = vector.shape_cast %236 : vector<1x16x32xf32> to vector<16x32xf32>
    %238 = arith.mulf %227, %219 : vector<16x32xf32>
    %239 = arith.addf %237, %238 : vector<16x32xf32>
    %240 = math.tanh %239 : vector<16x32xf32>
    %241 = arith.subf %214, %240 : vector<16x32xf32>
    %242 = arith.mulf %235, %241 : vector<16x32xf32>
    %243 = arith.addf %240, %242 : vector<16x32xf32>
    %cst_126 = arith.constant dense<0.000000e+00> : vector<16x32xf32>
    %244 = tpu.matmul %243, %65, %cst_126 {dimension_numbers = #tpu.dot_dimension_numbers<[1], [0], [0], [1], [0, 0, 1, 1], [], []>} : vector<16x32xf32>, vector<32x32xf32>, vector<16x32xf32> -> vector<16x32xf32>
    %cst_127 = arith.constant dense<0.000000e+00> : vector<16x32xf32>
    %245 = tpu.matmul %243, %66, %cst_127 {dimension_numbers = #tpu.dot_dimension_numbers<[1], [0], [0], [1], [0, 0, 1, 1], [], []>} : vector<16x32xf32>, vector<32x32xf32>, vector<16x32xf32> -> vector<16x32xf32>
    %cst_128 = arith.constant dense<0.000000e+00> : vector<16x32xf32>
    %246 = tpu.matmul %243, %67, %cst_128 {dimension_numbers = #tpu.dot_dimension_numbers<[1], [0], [0], [1], [0, 0, 1, 1], [], []>} : vector<16x32xf32>, vector<32x32xf32>, vector<16x32xf32> -> vector<16x32xf32>
    %247 = vector.broadcast %68 : vector<1x32xf32> to vector<16x32xf32>
    %248 = arith.addf %246, %247 : vector<16x32xf32>
    %c0_129 = arith.constant 0 : index
    %c96 = arith.constant 96 : index
    %c0_130 = arith.constant 0 : index
    %249 = vector.load %arg11[%c0_129, %c96, %c0_130] : memref<3x128x32xf32, #tpu.memory_space<vmem>>, vector<1x16x32xf32>
    %250 = vector.shape_cast %249 : vector<1x16x32xf32> to vector<16x32xf32>
    %251 = arith.addf %250, %244 : vector<16x32xf32>
    %252 = arith.negf %251 : vector<16x32xf32>
    %253 = math.exp %252 : vector<16x32xf32>
    %cst_131 = arith.constant 1.000000e+00 : f32
    %254 = vector.broadcast %cst_131 : f32 to vector<16x32xf32>
    %255 = arith.addf %254, %253 : vector<16x32xf32>
    %256 = arith.divf %254, %255 : vector<16x32xf32>
    %c1_132 = arith.constant 1 : index
    %c96_133 = arith.constant 96 : index
    %c0_134 = arith.constant 0 : index
    %257 = vector.load %arg11[%c1_132, %c96_133, %c0_134] : memref<3x128x32xf32, #tpu.memory_space<vmem>>, vector<1x16x32xf32>
    %258 = vector.shape_cast %257 : vector<1x16x32xf32> to vector<16x32xf32>
    %259 = arith.addf %258, %245 : vector<16x32xf32>
    %260 = arith.negf %259 : vector<16x32xf32>
    %261 = math.exp %260 : vector<16x32xf32>
    %cst_135 = arith.constant 1.000000e+00 : f32
    %262 = vector.broadcast %cst_135 : f32 to vector<16x32xf32>
    %263 = arith.addf %262, %261 : vector<16x32xf32>
    %264 = arith.divf %262, %263 : vector<16x32xf32>
    %c2_136 = arith.constant 2 : index
    %c96_137 = arith.constant 96 : index
    %c0_138 = arith.constant 0 : index
    %265 = vector.load %arg11[%c2_136, %c96_137, %c0_138] : memref<3x128x32xf32, #tpu.memory_space<vmem>>, vector<1x16x32xf32>
    %266 = vector.shape_cast %265 : vector<1x16x32xf32> to vector<16x32xf32>
    %267 = arith.mulf %256, %248 : vector<16x32xf32>
    %268 = arith.addf %266, %267 : vector<16x32xf32>
    %269 = math.tanh %268 : vector<16x32xf32>
    %270 = arith.subf %243, %269 : vector<16x32xf32>
    %271 = arith.mulf %264, %270 : vector<16x32xf32>
    %272 = arith.addf %269, %271 : vector<16x32xf32>
    %cst_139 = arith.constant dense<0.000000e+00> : vector<16x32xf32>
    %273 = tpu.matmul %272, %65, %cst_139 {dimension_numbers = #tpu.dot_dimension_numbers<[1], [0], [0], [1], [0, 0, 1, 1], [], []>} : vector<16x32xf32>, vector<32x32xf32>, vector<16x32xf32> -> vector<16x32xf32>
    %cst_140 = arith.constant dense<0.000000e+00> : vector<16x32xf32>
    %274 = tpu.matmul %272, %66, %cst_140 {dimension_numbers = #tpu.dot_dimension_numbers<[1], [0], [0], [1], [0, 0, 1, 1], [], []>} : vector<16x32xf32>, vector<32x32xf32>, vector<16x32xf32> -> vector<16x32xf32>
    %cst_141 = arith.constant dense<0.000000e+00> : vector<16x32xf32>
    %275 = tpu.matmul %272, %67, %cst_141 {dimension_numbers = #tpu.dot_dimension_numbers<[1], [0], [0], [1], [0, 0, 1, 1], [], []>} : vector<16x32xf32>, vector<32x32xf32>, vector<16x32xf32> -> vector<16x32xf32>
    %276 = vector.broadcast %68 : vector<1x32xf32> to vector<16x32xf32>
    %277 = arith.addf %275, %276 : vector<16x32xf32>
    %c0_142 = arith.constant 0 : index
    %c112 = arith.constant 112 : index
    %c0_143 = arith.constant 0 : index
    %278 = vector.load %arg11[%c0_142, %c112, %c0_143] : memref<3x128x32xf32, #tpu.memory_space<vmem>>, vector<1x16x32xf32>
    %279 = vector.shape_cast %278 : vector<1x16x32xf32> to vector<16x32xf32>
    %280 = arith.addf %279, %273 : vector<16x32xf32>
    %281 = arith.negf %280 : vector<16x32xf32>
    %282 = math.exp %281 : vector<16x32xf32>
    %cst_144 = arith.constant 1.000000e+00 : f32
    %283 = vector.broadcast %cst_144 : f32 to vector<16x32xf32>
    %284 = arith.addf %283, %282 : vector<16x32xf32>
    %285 = arith.divf %283, %284 : vector<16x32xf32>
    %c1_145 = arith.constant 1 : index
    %c112_146 = arith.constant 112 : index
    %c0_147 = arith.constant 0 : index
    %286 = vector.load %arg11[%c1_145, %c112_146, %c0_147] : memref<3x128x32xf32, #tpu.memory_space<vmem>>, vector<1x16x32xf32>
    %287 = vector.shape_cast %286 : vector<1x16x32xf32> to vector<16x32xf32>
    %288 = arith.addf %287, %274 : vector<16x32xf32>
    %289 = arith.negf %288 : vector<16x32xf32>
    %290 = math.exp %289 : vector<16x32xf32>
    %cst_148 = arith.constant 1.000000e+00 : f32
    %291 = vector.broadcast %cst_148 : f32 to vector<16x32xf32>
    %292 = arith.addf %291, %290 : vector<16x32xf32>
    %293 = arith.divf %291, %292 : vector<16x32xf32>
    %c2_149 = arith.constant 2 : index
    %c112_150 = arith.constant 112 : index
    %c0_151 = arith.constant 0 : index
    %294 = vector.load %arg11[%c2_149, %c112_150, %c0_151] : memref<3x128x32xf32, #tpu.memory_space<vmem>>, vector<1x16x32xf32>
    %295 = vector.shape_cast %294 : vector<1x16x32xf32> to vector<16x32xf32>
    %296 = arith.mulf %285, %277 : vector<16x32xf32>
    %297 = arith.addf %295, %296 : vector<16x32xf32>
    %298 = math.tanh %297 : vector<16x32xf32>
    %299 = arith.subf %272, %298 : vector<16x32xf32>
    %300 = arith.mulf %293, %299 : vector<16x32xf32>
    %301 = arith.addf %298, %300 : vector<16x32xf32>
    %c0_152 = arith.constant 0 : index
    %c0_153 = arith.constant 0 : index
    %c0_154 = arith.constant 0 : index
    %302 = vector.load %arg9[%c0_152, %c0_153, %c0_154] : memref<1x16x32xf32, #tpu.memory_space<vmem>>, vector<1x16x32xf32>
    %303 = vector.shape_cast %302 : vector<1x16x32xf32> to vector<16x32xf32>
    %304 = vector.shape_cast %301 : vector<16x32xf32> to vector<1x16x32xf32>
    tpu.vector_store %arg9[%c0_152, %c0_153, %c0_154], %304 {strides = array<i32>} : memref<1x16x32xf32, #tpu.memory_space<vmem>>, vector<1x16x32xf32>,
    return
  }
  func.func @transform_0(%arg0: i32) -> (i32, i32, i32) {
    %c0_i32 = arith.constant 0 : i32
    %c0_i32_0 = arith.constant 0 : i32
    %c0_i32_1 = arith.constant 0 : i32
    return %arg0, %c0_i32, %c0_i32_0 : i32, i32, i32
  }
  func.func @transform_1(%arg0: i32) -> (i32, i32) {
    %c0_i32 = arith.constant 0 : i32
    %c0_i32_0 = arith.constant 0 : i32
    %c0_i32_1 = arith.constant 0 : i32
    return %c0_i32, %c0_i32_0 : i32, i32
  }
  func.func @transform_2(%arg0: i32) -> (i32, i32) {
    %c0_i32 = arith.constant 0 : i32
    %c0_i32_0 = arith.constant 0 : i32
    %c0_i32_1 = arith.constant 0 : i32
    return %c0_i32, %c0_i32_0 : i32, i32
  }
  func.func @transform_3(%arg0: i32) -> (i32, i32) {
    %c0_i32 = arith.constant 0 : i32
    %c0_i32_0 = arith.constant 0 : i32
    %c0_i32_1 = arith.constant 0 : i32
    return %c0_i32, %c0_i32_0 : i32, i32
  }
  func.func @transform_4(%arg0: i32) -> (i32, i32) {
    %c0_i32 = arith.constant 0 : i32
    %c0_i32_0 = arith.constant 0 : i32
    %c0_i32_1 = arith.constant 0 : i32
    return %c0_i32, %c0_i32_0 : i32, i32
  }
  func.func @transform_5(%arg0: i32) -> (i32, i32) {
    %c0_i32 = arith.constant 0 : i32
    %c0_i32_0 = arith.constant 0 : i32
    %c0_i32_1 = arith.constant 0 : i32
    return %c0_i32, %c0_i32_0 : i32, i32
  }
  func.func @transform_6(%arg0: i32) -> (i32, i32) {
    %c0_i32 = arith.constant 0 : i32
    %c0_i32_0 = arith.constant 0 : i32
    %c0_i32_1 = arith.constant 0 : i32
    return %c0_i32, %c0_i32_0 : i32, i32
  }
  func.func @transform_7(%arg0: i32) -> (i32, i32) {
    %c0_i32 = arith.constant 0 : i32
    %c0_i32_0 = arith.constant 0 : i32
    %c0_i32_1 = arith.constant 0 : i32
    return %c0_i32, %c0_i32_0 : i32, i32
  }
  func.func @transform_8(%arg0: i32) -> (i32, i32, i32) {
    %c0_i32 = arith.constant 0 : i32
    %c0_i32_0 = arith.constant 0 : i32
    %c0_i32_1 = arith.constant 0 : i32
    return %arg0, %c0_i32, %c0_i32_0 : i32, i32, i32
  }
  func.func @transform_9(%arg0: i32) -> (i32, i32, i32) {
    %c0_i32 = arith.constant 0 : i32
    %c0_i32_0 = arith.constant 0 : i32
    %c0_i32_1 = arith.constant 0 : i32
    return %arg0, %c0_i32, %c0_i32_0 : i32, i32, i32
  }
}

</mosaic_0001>

<bundles_post_ra>
// kernel: tpu_custom_call.1
= control target key start
LH: loop header
LB: loop body
LE: loop exit
PB: predicated region body
PF: predicated region fallthrough
CT: control target
= control target key end

     0   :  { %15 = vsyncpa [#allocation4], 0  ;;  %s6005_s0 = inlined_call_operand.vmem [shape: f32[2,128,4], index: 0, kind: input, shape index: {}]   ;;  %s6006_s1 = inlined_call_operand.vmem [shape: f32[16,16], index: 1, kind: input, shape index: {}]   ;;  %s6007_s2 = inlined_call_operand.vmem [shape: f32[4,32], index: 2, kind: input, shape index: {}]   ;;  %s6008_s3 = inlined_call_operand.vmem [shape: f32[4,32], index: 3, kind: input, shape index: {}]   ;;  %s6009_s4 = inlined_call_operand.vmem [shape: f32[32,96], index: 4, kind: input, shape index: {}]   ;;  %s6010_s5 = inlined_call_operand.vmem [shape: f32[1,96], index: 5, kind: input, shape index: {}]   ;;  %s6011_s6 = inlined_call_operand.vmem [shape: f32[32,96], index: 6, kind: input, shape index: {}]   ;;  %s6012_s7 = inlined_call_operand.vmem [shape: f32[1,32], index: 7, kind: input, shape index: {}]   ;;  %s6013_s8 = inlined_call_operand.hbm [shape: f32[2,16,32], index: 8, kind: output, shape index: {0}]   ;;  %s6014_s9 = inlined_call_operand.hbm [shape: f32[2,16,32], index: 9, kind: output, shape index: {1}]  }
   0x1   :  { %17 = vsyncpa [#allocation4 + $0x1], 0 }
   0x2   :  { %18 = vsyncpa [#allocation6], 0 }
   0x3   :  { %20 = vsyncpa [#allocation6 + $0x1], 0  ;;  %s5212_s30 = smov 0   ;;  %s5214_s10 = smov 0  }
   0x4   :  { %s5216_s11 = smov 0   ;;  %s5218_s12 = smov 0  }
   0x5 LB: > { %s5233_s13 = sadd.s32 4294967295, %s5153_s12   ;;  %s4090_s14 = sadd.s32 4294967294, %s5153_s12   ;;  %s5153_s12 = sphi %s5218_s12, %s6027_s12   ;;  %s5149_s11 = sphi %s5216_s11, %s6026_s11   ;;  %s5145_s10 = sphi %s5214_s10, %s6025_s10   ;;  %s5141_s30 = sphi %s5212_s30, %s6024_s30  }
   0x6   : > { %s5237_s15 = sadd.s32 1, %s5153_s12   ;;  %s206_s16 = sadd.s32 1, %s5149_s11 }
   0x7   : > { %s203_s17 = ssub.s32 %s5153_s12, %s5237_s15  ;;  %p216_p0 = scmp.ne.s32.totalorder %s5149_s11, %s5145_s10 }
   0x8   : > { %p204_p1 = scmp.eq.s32.totalorder %s203_s17, 0  ;;  %p217_p2 = scmp.eq.s32.totalorder %s5233_s13, 1 }
   0x9   : > { %p222_p3 = scmp.ne.s32.totalorder %s5145_s10, %s5141_s30  ;;  %p223_p4 = scmp.eq.s32.totalorder %s4090_s14, 1 }
   0xa   : > { %s5248_s18 = scalar_select %p204_p1, %s5149_s11, %s206_s16  }
   0xb   : > { %p5250_p5 = por %p217_p2, %p216_p0  ;;  %p5254_p6 = por %p223_p4, %p222_p3 }
   0xc   : > { %p4093_p7 = scmp.ge.s32.totalorder %s5153_s12, 1  ;;  %p296_p8 = scmp.lt.s32.totalorder %s5153_s12, 3 }
   0xe   : > { %p297_p9 = pnand %p4093_p7, %p296_p8 }
   0xf   : > { %p337_p10 = scmp.lt.s32.totalorder (!%p297_p9), %s5233_s13, 1  ;;  %s5155_s26 = smov (!%p297_p9), 96  }
  0x10   : > { %300 = sbr.rel (%p297_p9) target bundleno = 2773 (0xad5), region = 52  ;;  %s5376_s29 = sand.u32 (!%p297_p9), 1, %s5145_s10  }
  0x11   : > { %s6016_s14 = sshll.u32 (!%p297_p9), %s5376_s29, 4  ;;  %s6015_s25 = sshll.u32 (!%p297_p9), %s5233_s13, 8 }
  0x12   : > { %s5381_s16 = scalar_lea.vmem (!%p297_p9), [#allocation5], %s6016_s14  ;;  %s5919_s17 = scalar_lea.hbm (!%p297_p9), %s6014_s9, %s6015_s25 }
  0x13   : > { %s5158_s22 = smov (!%p297_p9), [#allocation5]  }
  0x15   : > { %v360_v0 = vld [vmem:[%s6008_s3] sm:$0xf]  ;;  %vm368_vm0 = vcmask 1043456   ;;  %s338_s23 = scalar_select %p337_p10, %s5233_s13, 1  ;;  %vm361_vm1 = vcmask 31744   ;;  %vm447_vm2 = vcmask 130048  }
  0x16   : > { %4459 = vmatprep.subr.msk.mxu0 %vm368_vm0, %v360_v0  ;;  %v5279_v3 = vld [vmem:[%s6006_s1] sm:$0xff]  ;;  %v5288_v6 = vld [vmem:[%s6006_s1 + $0x8] sm:$0xff]  ;;  %v5329_v22 = vld [vmem:[%s6011_s6 + $0x18] sm:$0xff]  ;;  %vm531_vm3 = vcmask 261120   ;;  %v5157_v51 = vmov 0.0  }
  0x17   : > { %4460 = vmatpush3.msk.msra.mxu0 %vm368_vm0, %v360_v0  ;;  %s4236_s24 = sshll.u32 %s338_s23, 7  ;;  %4501 = vmatprep.mubr.msk.f32.mxu1 %vm447_vm2, %v5279_v3  ;;  %v534_v7 = vld [vmem:[%s6007_s2] sm:$0xf]  ;;  %v5334_v23 = vld [vmem:[%s6011_s6 + $0x8] sm:$0xff]  ;;  %v1344_v24 = vld [vmem:[%s6009_s4 + $0x18] sm:$0xff]  ;;  %s5156_s23 = smov 64  }
  0x18   : > { %s5270_s27 = scalar_lea.vmem %s6005_s0, %s4236_s24  ;;  %1800 = vrot.lane.b32.xlu0 %v5329_v22, %s5155_s26  ;;  %1796 = vrot.lane.b32.xlu1 %v5334_v23, %s5155_s26  ;;  %v5346_v25 = vld [vmem:[%s6011_s6 + $0x10] sm:$0xff]  ;;  %v5351_v26 = vld [vmem:[%s6011_s6] sm:$0xff]  ;;  %s3996_s24 = sshll.u32 %s5381_s16, 4  ;;  %s5912_s24 = int_to_ptr.vmem [resolvable:$true] %s3996_s24 }
  0x19   : > { %v358_v1 = vld [vmem:[%s5270_s27 + $0x70] sm:$0xff]  ;;  %v359_v2 = vld [vmem:[%s5270_s27 + $0x78] sm:$0xff]  ;;  %v344_v8 = vld [vmem:[%s5270_s27] sm:$0xff] }
  0x1a   : > { %4461 = vmatprep.mubr.msk.f32.mxu0 %vm361_vm1, %v358_v1  ;;  %v345_v9 = vld [vmem:[%s5270_s27 + $0x8] sm:$0xff]  ;;  %v346_v10 = vld [vmem:[%s5270_s27 + $0x10] sm:$0xff]  ;;  %v347_v11 = vld [vmem:[%s5270_s27 + $0x18] sm:$0xff] }
  0x1b   : > { %4462 = vmatmul.mubr.msk.f32.vlgmr.msra.gmra.mxu0 %vm361_vm1, %v359_v2  ;;  %v348_v12 = vld [vmem:[%s5270_s27 + $0x20] sm:$0xff]  ;;  %v349_v13 = vld [vmem:[%s5270_s27 + $0x28] sm:$0xff]  ;;  %v350_v14 = vld [vmem:[%s5270_s27 + $0x30] sm:$0xff] }
  0x1c   : > { %4468 = vmatprep.mubr.msk.f32.mxu0 %vm447_vm2, %v5279_v3  ;;  %v351_v15 = vld [vmem:[%s5270_s27 + $0x38] sm:$0xff]  ;;  %v352_v16 = vld [vmem:[%s5270_s27 + $0x40] sm:$0xff]  ;;  %v353_v17 = vld [vmem:[%s5270_s27 + $0x48] sm:$0xff]  ;;  %1798 = vrot.lane.b32.xlu0 %v5346_v25, %s5155_s26 }
  0x1d   : > { %v354_v18 = vld [vmem:[%s5270_s27 + $0x50] sm:$0xff]  ;;  %v355_v19 = vld [vmem:[%s5270_s27 + $0x58] sm:$0xff]  ;;  %v356_v20 = vld [vmem:[%s5270_s27 + $0x60] sm:$0xff]  ;;  %1794 = vrot.lane.b32.xlu1 %v5351_v26, %s5155_s26 }
  0x1e   : > { %v357_v21 = vld [vmem:[%s5270_s27 + $0x68] sm:$0xff]  ;;  %v1343_v27 = vld [vmem:[%s6009_s4 + $0x10] sm:$0xff]  ;;  %v1341_v29 = vld [vmem:[%s6009_s4] sm:$0xff] }
  0x1f   : > { %v1342_v28 = vld [vmem:[%s6009_s4 + $0x8] sm:$0xff] }
  0x20   : > { %1893 = vrot.lane.b32.xlu0 %v5329_v22, %s5156_s23 }
  0x21   : > { %1891 = vrot.lane.b32.xlu1 %v5346_v25, %s5156_s23 }
  0x24   : > { %1889 = vrot.lane.b32.xlu0 %v5334_v23, %s5156_s23 }
  0x25   : > { %1887 = vrot.lane.b32.xlu1 %v5351_v26, %s5156_s23 }
  0x8a   : > { %v5415_v50 = vpop.permute.xlu0 %1800  ;;  %v5422_v52 = vpop.permute.xlu1 %1796 }
  0x8e   : > { %v5430_v53 = vpop.permute.xlu0 %1798 }
  0x8f   : > { %v5432_v54 = vpop.permute.xlu1 %1794 }
  0x92   : > { %v5438_v55 = vpop.permute.xlu0 %1893 }
  0x93   : > { %v5442_v56 = vpop.permute.xlu1 %1891 }
  0x96   : > { %v5448_v57 = vpop.permute.xlu0 %1889 }
  0x97   : > { %v5452_v58 = vpop.permute.xlu1 %1887 }
  0xdb   : > { %v4463_v4 = vpop.f32.mrf.mxu0 }
  0xdc   : > { %4464 = vmatprep.subr.mxu0 %v4463_v4 }
  0xdd   : > { %v438_v5 = vpop.f32.mrf.mxu0  ;;  %4465 = vmatpush3.msra.mxu0 %v4463_v4 }
  0xde   : > { %4466 = vmatprep.subr.mxu0 %v438_v5 }
  0xdf   : > { %4467 = vmatpush3.msra.mxu0 %v438_v5 }
  0xe0   : > { %4469 = vmatmul.mubr.msk.f32.vlgmr.msra.gmra.mxu0 %vm447_vm2, %v5288_v6  ;;  %4471 = vmatprep.subr.msk.mxu0 %vm368_vm0, %v534_v7 }
  0xe1   : > { %4472 = vmatpush3.msk.msra.mxu0 %vm368_vm0, %v534_v7  ;;  %4473 = vmatprep.mubr.msk.f32.mxu0 %vm361_vm1, %v344_v8 }
  0xe2   : > { %4553 = vmatprep.subr.mxu0 %v1344_v24 }
  0xe4   : > { %4474 = vmatmul.mubr.msk.f32.vlgmr.msra.gmra.mxu0 %vm361_vm1, %v345_v9 }
  0xe5   : > { %4476 = vmatprep.mubr.msk.f32.mxu0 %vm361_vm1, %v346_v10  ;;  %4554 = vmatpush3.msra.mxu0 %v1344_v24 }
  0xe6   : > { %4555 = vmatprep.subr.mxu0 %v1343_v27 }
  0xe7   : > { %4556 = vmatpush3.msra.mxu0 %v1343_v27 }
  0xe8   : > { %4477 = vmatmul.mubr.msk.f32.gmra.mxu0 %vm361_vm1, %v347_v11  ;;  %4557 = vmatprep.subr.mxu0 %v1342_v28 }
  0xe9   : > { %4479 = vmatprep.mubr.msk.f32.mxu0 %vm361_vm1, %v348_v12  ;;  %4558 = vmatpush3.msra.mxu0 %v1342_v28 }
  0xea   : > { %4559 = vmatprep.subr.mxu0 %v1341_v29 }
  0xeb   : > { %4560 = vmatpush3.msra.mxu0 %v1341_v29 }
  0xec   : > { %4480 = vmatmul.mubr.msk.f32.gmra.mxu0 %vm361_vm1, %v349_v13  ;;  %4629 = vmatprep.subr.mxu0 %v5415_v50 }
  0xed   : > { %4482 = vmatprep.mubr.msk.f32.mxu0 %vm361_vm1, %v350_v14 }
  0xf0   : > { %4483 = vmatmul.mubr.msk.f32.gmra.mxu0 %vm361_vm1, %v351_v15 }
  0xf1   : > { %4485 = vmatprep.mubr.msk.f32.mxu0 %vm361_vm1, %v352_v16 }
  0xf4   : > { %4486 = vmatmul.mubr.msk.f32.gmra.mxu0 %vm361_vm1, %v353_v17 }
  0xf5   : > { %4488 = vmatprep.mubr.msk.f32.mxu0 %vm361_vm1, %v354_v18 }
  0xf8   : > { %4489 = vmatmul.mubr.msk.f32.gmra.mxu0 %vm361_vm1, %v355_v19 }
  0xf9   : > { %4491 = vmatprep.mubr.msk.f32.mxu0 %vm361_vm1, %v356_v20 }
  0xfc   : > { %4492 = vmatmul.mubr.msk.f32.gmra.mxu0 %vm361_vm1, %v357_v21 }
  0xfd   : > { %4494 = vmatprep.mubr.msk.f32.mxu0 %vm361_vm1, %v358_v1 }
 0x100   : > { %4495 = vmatmul.mubr.msk.f32.gmra.mxu0 %vm361_vm1, %v359_v2 }
 0x1a0   : > { %v4470_v30 = vpop.f32.mrf.mxu0 }
 0x1a1   : > { %v530_v31 = vmax.f32 %v4470_v30, 0.0 }
 0x1a2   : > { %v520_v32 = vpop.f32.mrf.mxu0 }
 0x1a3   : > { %533 = vst.msk [vmem:[%s5381_s16 + $0x8] sm:$0xff] %vm531_vm3, %v530_v31  ;;  %v529_v33 = vmax.f32 %v520_v32, 0.0  ;;  %v5494_v31 = vld [vmem:[%s6010_s5] ss:$0 sm:$0xff] }
 0x1a4   : > { %v4475_v34 = vpop.f32.mrf.mxu0 }
 0x1a5   : > { %532 = vst.msk [vmem:[%s5381_s16] sm:$0xff] %vm531_vm3, %v529_v33  ;;  %4497 = vmatprep.subr.mxu1 %v4475_v34  ;;  %s5067_s16 = sshll.u32 %s5158_s22, 4  ;;  %s5068_s16 = int_to_ptr.vmem [resolvable:$false] %s5067_s16 }
 0x1a6   : > { %v646_v35 = vpop.f32.mrf.mxu0  ;;  %4498 = vmatpush3.msra.mxu1 %v4475_v34  ;;  %p5070_p0 = scmp.lt.s32.totalorder %s5912_s24, %s5068_s16 }
 0x1a7   : > { %4499 = vmatprep.subr.mxu1 %v646_v35 }
 0x1a8   : > { %4500 = vmatpush3.msra.mxu1 %v646_v35  ;;  %v4478_v36 = vpop.f32.mrf.mxu0 }
 0x1a9   : > { %4502 = vmatmul.mubr.msk.f32.vlgmr.msra.gmra.mxu1 %vm447_vm2, %v5288_v6  ;;  %4504 = vmatprep.subr.mxu1 %v4478_v36 }
 0x1aa   : > { %v656_v37 = vpop.f32.mrf.mxu0  ;;  %4505 = vmatpush3.msra.mxu1 %v4478_v36  ;;  %4508 = vmatprep.mubr.msk.f32.mxu1 %vm447_vm2, %v5279_v3 }
 0x1ab   : > { %4506 = vmatprep.subr.mxu1 %v656_v37 }
 0x1ac   : > { %v4481_v38 = vpop.f32.mrf.mxu0  ;;  %4507 = vmatpush3.msra.mxu1 %v656_v37 }
 0x1ad   : > { %4511 = vmatprep.subr.mxu1 %v4481_v38  ;;  %4509 = vmatmul.mubr.msk.f32.vlgmr.msra.gmra.mxu1 %vm447_vm2, %v5288_v6 }
 0x1ae   : > { %v666_v39 = vpop.f32.mrf.mxu0  ;;  %4512 = vmatpush3.msra.mxu1 %v4481_v38  ;;  %4515 = vmatprep.mubr.msk.f32.mxu1 %vm447_vm2, %v5279_v3 }
 0x1af   : > { %4513 = vmatprep.subr.mxu1 %v666_v39 }
 0x1b0   : > { %v4484_v40 = vpop.f32.mrf.mxu0  ;;  %4514 = vmatpush3.msra.mxu1 %v666_v39 }
 0x1b1   : > { %4518 = vmatprep.subr.mxu1 %v4484_v40  ;;  %4516 = vmatmul.mubr.msk.f32.vlgmr.msra.gmra.mxu1 %vm447_vm2, %v5288_v6 }
 0x1b2   : > { %v676_v41 = vpop.f32.mrf.mxu0  ;;  %4519 = vmatpush3.msra.mxu1 %v4484_v40  ;;  %4522 = vmatprep.mubr.msk.f32.mxu1 %vm447_vm2, %v5279_v3 }
 0x1b3   : > { %4520 = vmatprep.subr.mxu1 %v676_v41 }
 0x1b4   : > { %4521 = vmatpush3.msra.mxu1 %v676_v41  ;;  %v4487_v42 = vpop.f32.mrf.mxu0 }
 0x1b5   : > { %4523 = vmatmul.mubr.msk.f32.vlgmr.msra.gmra.mxu1 %vm447_vm2, %v5288_v6  ;;  %4525 = vmatprep.subr.mxu1 %v4487_v42 }
 0x1b6   : > { %4529 = vmatprep.mubr.msk.f32.mxu1 %vm447_vm2, %v5279_v3  ;;  %v686_v43 = vpop.f32.mrf.mxu0  ;;  %4526 = vmatpush3.msra.mxu1 %v4487_v42 }
 0x1b7   : > { %4527 = vmatprep.subr.mxu1 %v686_v43 }
 0x1b8   : > { %v4490_v44 = vpop.f32.mrf.mxu0  ;;  %4528 = vmatpush3.msra.mxu1 %v686_v43 }
 0x1b9   : > { %4532 = vmatprep.subr.mxu1 %v4490_v44  ;;  %4530 = vmatmul.mubr.msk.f32.vlgmr.msra.gmra.mxu1 %vm447_vm2, %v5288_v6 }
 0x1ba   : > { %v696_v45 = vpop.f32.mrf.mxu0  ;;  %4533 = vmatpush3.msra.mxu1 %v4490_v44  ;;  %4536 = vmatprep.mubr.msk.f32.mxu1 %vm447_vm2, %v5279_v3 }
 0x1bb   : > { %4534 = vmatprep.subr.mxu1 %v696_v45 }
 0x1bc   : > { %v4493_v46 = vpop.f32.mrf.mxu0  ;;  %4535 = vmatpush3.msra.mxu1 %v696_v45 }
 0x1bd   : > { %4539 = vmatprep.subr.mxu1 %v4493_v46  ;;  %4537 = vmatmul.mubr.msk.f32.vlgmr.msra.gmra.mxu1 %vm447_vm2, %v5288_v6 }
 0x1be   : > { %v706_v47 = vpop.f32.mrf.mxu0  ;;  %4540 = vmatpush3.msra.mxu1 %v4493_v46  ;;  %4543 = vmatprep.mubr.msk.f32.mxu1 %vm447_vm2, %v5279_v3 }
 0x1bf   : > { %4541 = vmatprep.subr.mxu1 %v706_v47 }
 0x1c0   : > { %v4496_v48 = vpop.f32.mrf.mxu0  ;;  %4542 = vmatpush3.msra.mxu1 %v706_v47 }
 0x1c1   : > { %4546 = vmatprep.subr.mxu1 %v4496_v48  ;;  %4544 = vmatmul.mubr.msk.f32.vlgmr.msra.gmra.mxu1 %vm447_vm2, %v5288_v6 }
 0x1c2   : > { %v716_v49 = vpop.f32.mrf.mxu0  ;;  %4547 = vmatpush3.msra.mxu1 %v4496_v48  ;;  %4550 = vmatprep.mubr.msk.f32.mxu1 %vm447_vm2, %v5279_v3 }
 0x1c3   : > { %4548 = vmatprep.subr.mxu1 %v716_v49 }
 0x1c4   : > { %4549 = vmatpush3.msra.mxu1 %v716_v49 }
 0x1c5   : > { %4585 = vmatprep.subr.mxu1 %v5329_v22  ;;  %4551 = vmatmul.mubr.msk.f32.vlgmr.msra.gmra.mxu1 %vm447_vm2, %v5288_v6 }
 0x1c6   : > { %4586 = vmatpush3.msra.mxu1 %v5329_v22  ;;  %4593 = vmatprep.mubr.f32.mxu1 %v5157_v51 }
 0x1c7   : > { %4587 = vmatprep.subr.mxu1 %v5346_v25 }
 0x1c8   : > { %4588 = vmatpush3.msra.mxu1 %v5346_v25 }
 0x1c9   : > { %4589 = vmatprep.subr.mxu1 %v5334_v23 }
 0x1ca   : > { %4590 = vmatpush3.msra.mxu1 %v5334_v23 }
 0x1cb   : > { %4591 = vmatprep.subr.mxu1 %v5351_v26 }
 0x1cc   : > { %4592 = vmatpush3.msra.mxu1 %v5351_v26 }
 0x1cd   : > { %4594 = vmatmul.mubr.f32.vlgmr.msra.gmra.mxu1 %v5157_v51  ;;  %4596 = vmatprep.subr.mxu1 %v5415_v50 }
 0x1ce   : > { %4597 = vmatpush3.msra.mxu1 %v5415_v50  ;;  %4604 = vmatprep.mubr.f32.mxu1 %v5157_v51 }
 0x1cf   : > { %4598 = vmatprep.subr.mxu1 %v5430_v53 }
 0x1d0   : > { %4599 = vmatpush3.msra.mxu1 %v5430_v53 }
 0x1d1   : > { %4600 = vmatprep.subr.mxu1 %v5422_v52 }
 0x1d2   : > { %4601 = vmatpush3.msra.mxu1 %v5422_v52 }
 0x1d3   : > { %4602 = vmatprep.subr.mxu1 %v5432_v54 }
 0x1d4   : > { %4603 = vmatpush3.msra.mxu1 %v5432_v54 }
 0x1d5   : > { %4607 = vmatprep.subr.mxu1 %v5438_v55  ;;  %4605 = vmatmul.mubr.f32.vlgmr.msra.gmra.mxu1 %v5157_v51 }
 0x1d6   : > { %4608 = vmatpush3.msra.mxu1 %v5438_v55  ;;  %4615 = vmatprep.mubr.f32.mxu1 %v5157_v51 }
 0x1d7   : > { %4609 = vmatprep.subr.mxu1 %v5442_v56 }
 0x1d8   : > { %4610 = vmatpush3.msra.mxu1 %v5442_v56 }
 0x1d9   : > { %4611 = vmatprep.subr.mxu1 %v5448_v57 }
 0x1da   : > { %4612 = vmatpush3.msra.mxu1 %v5448_v57 }
 0x1db   : > { %4613 = vmatprep.subr.mxu1 %v5452_v58 }
 0x1dc   : > { %4614 = vmatpush3.msra.mxu1 %v5452_v58 }
 0x1dd   : > { %4616 = vmatmul.mubr.f32.vlgmr.msra.gmra.mxu1 %v5157_v51  ;;  %4618 = vmatprep.subr.mxu1 %v5329_v22 }
 0x1de   : > { %4619 = vmatpush3.msra.mxu1 %v5329_v22 }
 0x1df   : > { %4620 = vmatprep.subr.mxu1 %v5346_v25 }
 0x1e0   : > { %4621 = vmatpush3.msra.mxu1 %v5346_v25 }
 0x1e1   : > { %4622 = vmatprep.subr.mxu1 %v5334_v23 }
 0x1e2   : > { %4623 = vmatpush3.msra.mxu1 %v5334_v23 }
 0x1e3   : > { %4624 = vmatprep.subr.mxu1 %v5351_v26 }
 0x1e4   : > { %4625 = vmatpush3.msra.mxu1 %v5351_v26 }
 0x1e5   : > { %4640 = vmatprep.subr.mxu1 %v5438_v55 }
 0x269   : > { %v4503_v59 = vpop.f32.mrf.mxu1 }
 0x26a   : > { %v801_v62 = vmax.f32 %v4503_v59, 0.0 }
 0x26b   : > { %v791_v60 = vpop.f32.mrf.mxu1 }
 0x26c   : > { %v800_v61 = vmax.f32 %v791_v60, 0.0 }
 0x26d   : > { %v4510_v63 = vpop.f32.mrf.mxu1 }
 0x26e   : > { %4561 = vmatprep.mubr.msk.f32.mxu0 %vm531_vm3, %v800_v61  ;;  %v878_v0 = vmax.f32 %v4510_v63, 0.0 }
 0x26f   : > { %4562 = vmatmul.mubr.msk.f32.vlgmr.msra.gmra.mxu0 %vm531_vm3, %v801_v62  ;;  %v868_v1 = vpop.f32.mrf.mxu1 }
 0x270   : > { %4630 = vmatpush3.msra.mxu0 %v5415_v50  ;;  %v877_v2 = vmax.f32 %v868_v1, 0.0 }
 0x271   : > { %4631 = vmatprep.subr.mxu0 %v5430_v53  ;;  %v4517_v3 = vpop.f32.mrf.mxu1 }
 0x272   : > { %4632 = vmatpush3.msra.mxu0 %v5430_v53  ;;  %4564 = vmatprep.mubr.msk.f32.mxu0 %vm531_vm3, %v877_v2  ;;  %v955_v4 = vmax.f32 %v4517_v3, 0.0 }
 0x273   : > { %4633 = vmatprep.subr.mxu0 %v5422_v52  ;;  %v945_v5 = vpop.f32.mrf.mxu1  ;;  %4565 = vmatmul.mubr.msk.f32.gmra.mxu0 %vm531_vm3, %v878_v0 }
 0x274   : > { %4634 = vmatpush3.msra.mxu0 %v5422_v52  ;;  %v954_v6 = vmax.f32 %v945_v5, 0.0 }
 0x275   : > { %4635 = vmatprep.subr.mxu0 %v5432_v54  ;;  %v4524_v7 = vpop.f32.mrf.mxu1 }
 0x276   : > { %4636 = vmatpush3.msra.mxu0 %v5432_v54  ;;  %4567 = vmatprep.mubr.msk.f32.mxu0 %vm531_vm3, %v954_v6  ;;  %v1032_v8 = vmax.f32 %v4524_v7, 0.0 }
 0x277   : > { %v1022_v9 = vpop.f32.mrf.mxu1  ;;  %4568 = vmatmul.mubr.msk.f32.gmra.mxu0 %vm531_vm3, %v955_v4  ;;  %4651 = vmatprep.subr.mxu0 %v5329_v22 }
 0x278   : > { %v1031_v10 = vmax.f32 %v1022_v9, 0.0 }
 0x279   : > { %v4531_v11 = vpop.f32.mrf.mxu1 }
 0x27a   : > { %4570 = vmatprep.mubr.msk.f32.mxu0 %vm531_vm3, %v1031_v10  ;;  %v1109_v12 = vmax.f32 %v4531_v11, 0.0 }
 0x27b   : > { %4571 = vmatmul.mubr.msk.f32.gmra.mxu0 %vm531_vm3, %v1032_v8  ;;  %v1099_v13 = vpop.f32.mrf.mxu1 }
 0x27c   : > { %v1108_v14 = vmax.f32 %v1099_v13, 0.0 }
 0x27d   : > { %v4538_v15 = vpop.f32.mrf.mxu1 }
 0x27e   : > { %4573 = vmatprep.mubr.msk.f32.mxu0 %vm531_vm3, %v1108_v14  ;;  %v1186_v16 = vmax.f32 %v4538_v15, 0.0 }
 0x27f   : > { %v1176_v17 = vpop.f32.mrf.mxu1  ;;  %4574 = vmatmul.mubr.msk.f32.gmra.mxu0 %vm531_vm3, %v1109_v12 }
 0x280   : > { %v1185_v18 = vmax.f32 %v1176_v17, 0.0 }
 0x281   : > { %v4545_v19 = vpop.f32.mrf.mxu1 }
 0x282   : > { %4576 = vmatprep.mubr.msk.f32.mxu0 %vm531_vm3, %v1185_v18  ;;  %v1263_v20 = vmax.f32 %v4545_v19, 0.0 }
 0x283   : > { %4577 = vmatmul.mubr.msk.f32.gmra.mxu0 %vm531_vm3, %v1186_v16  ;;  %v1253_v21 = vpop.f32.mrf.mxu1 }
 0x284   : > { %v1262_v24 = vmax.f32 %v1253_v21, 0.0 }
 0x285   : > { %v4552_v27 = vpop.f32.mrf.mxu1 }
 0x286   : > { %4579 = vmatprep.mubr.msk.f32.mxu0 %vm531_vm3, %v1262_v24  ;;  %v1340_v28 = vmax.f32 %v4552_v27, 0.0 }
 0x287   : > { %v1330_v29 = vpop.f32.mrf.mxu1  ;;  %4580 = vmatmul.mubr.msk.f32.gmra.mxu0 %vm531_vm3, %v1263_v20 }
 0x288   : > { %v1339_v30 = vmax.f32 %v1330_v29, 0.0 }
 0x28a   : > { %4582 = vmatprep.mubr.msk.f32.mxu0 %vm531_vm3, %v1339_v30 }
 0x28b   : > { %4583 = vmatmul.mubr.msk.f32.gmra.mxu0 %vm531_vm3, %v1340_v28 }
 0x28d   : > { %v4595_v8 = vpop.f32.mrf.mxu1 }
 0x28f   : > { %v1781_v10 = vpop.f32.mrf.mxu1 }
 0x295   : > { %v4606_v21 = vpop.f32.mrf.mxu1 }
 0x297   : > { %v1872_v28 = vpop.f32.mrf.mxu1 }
 0x32f   : > { %v4563_v32 = vpop.f32.mrf.mxu0 }
 0x330   : > { %v1472_v33 = vadd.f32 %v4563_v32, %v5494_v31  ;;  %v4617_v32 = vpop.f32.mrf.mxu1 }
 0x331   : > { %v1466_v34 = vpop.f32.mrf.mxu0 }
 0x332   : > { %1546 = vst.msk [vmem:[#allocation2 + $0x8] sm:$0xff] %vm531_vm3, %v1472_v33  ;;  %v1467_v35 = vadd.f32 %v5494_v31, %v1466_v34  ;;  %1579 = vrot.lane.b32.xlu1 %v1472_v33, %s5155_s26 }
 0x333   : > { %v4566_v36 = vpop.f32.mrf.mxu0 }
 0x334   : > { %1545 = vst.msk [vmem:[#allocation2] sm:$0xff] %vm531_vm3, %v1467_v35  ;;  %1577 = vrot.lane.b32.xlu0 %v1467_v35, %s5155_s26  ;;  %v1482_v37 = vadd.f32 %v4566_v36, %v5494_v31  ;;  %v5567_v36 = vld [vmem:[%s6012_s7] ss:$0 sm:$0xff] }
 0x335   : > { %v1476_v38 = vpop.f32.mrf.mxu0 }
 0x336   : > { %1644 = vrot.lane.b32.xlu1 %v1472_v33, %s5156_s23  ;;  %1548 = vst.msk [vmem:[#allocation2 + $0x18] sm:$0xff] %vm531_vm3, %v1482_v37  ;;  %v1477_v39 = vadd.f32 %v5494_v31, %v1476_v38  ;;  %v1965_v38 = vpop.f32.mrf.mxu1 }
 0x337   : > { %v4569_v40 = vpop.f32.mrf.mxu0 }
 0x338   : > { %1642 = vrot.lane.b32.xlu0 %v1467_v35, %s5156_s23  ;;  %1547 = vst.msk [vmem:[#allocation2 + $0x10] sm:$0xff] %vm531_vm3, %v1477_v39  ;;  %v1492_v41 = vadd.f32 %v4569_v40, %v5494_v31 }
 0x339   : > { %v1486_v42 = vpop.f32.mrf.mxu0  ;;  %v1975_v9 = vld [vmem:[#allocation2 + $0x8] sm:$0xff] }
 0x33a   : > { %1583 = vrot.lane.b32.xlu1 %v1482_v37, %s5155_s26  ;;  %1550 = vst.msk [vmem:[#allocation2 + $0x28] sm:$0xff] %vm531_vm3, %v1492_v41  ;;  %v1487_v43 = vadd.f32 %v5494_v31, %v1486_v42  ;;  %v1977_v12 = vadd.f32 %v4595_v8, %v1975_v9 }
 0x33b   : > { %v4572_v44 = vpop.f32.mrf.mxu0  ;;  %v1974_v11 = vld [vmem:[#allocation2] sm:$0xff] }
 0x33c   : > { %1581 = vrot.lane.b32.xlu0 %v1477_v39, %s5155_s26  ;;  %1549 = vst.msk [vmem:[#allocation2 + $0x20] sm:$0xff] %vm531_vm3, %v1487_v43  ;;  %v1502_v45 = vadd.f32 %v4572_v44, %v5494_v31  ;;  %v1976_v13 = vadd.f32 %v1974_v11, %v1781_v10  ;;  %v4155_v14 = vmul.f32 -1.442695, %v1977_v12 }
 0x33d   : > { %v1496_v46 = vpop.f32.mrf.mxu0 }
 0x33e   : > { %1648 = vrot.lane.b32.xlu1 %v1482_v37, %s5156_s23  ;;  %1552 = vst.msk [vmem:[#allocation2 + $0x38] sm:$0xff] %vm531_vm3, %v1502_v45  ;;  %v1497_v47 = vadd.f32 %v5494_v31, %v1496_v46  ;;  %v4154_v15 = vmul.f32 -1.442695, %v1976_v13  ;;  %4898 = vpow2.f32 %v4155_v14 }
 0x33f   : > { %v4575_v48 = vpop.f32.mrf.mxu0 }
 0x340   : > { %1646 = vrot.lane.b32.xlu0 %v1477_v39, %s5156_s23  ;;  %1551 = vst.msk [vmem:[#allocation2 + $0x30] sm:$0xff] %vm531_vm3, %v1497_v47  ;;  %v1512_v49 = vadd.f32 %v4575_v48, %v5494_v31  ;;  %4900 = vpow2.f32 %v4154_v15  ;;  %v1971_v39 = vadd.f32 %v4617_v32, %v5567_v36 }
 0x341   : > { %v1506_v51 = vpop.f32.mrf.mxu0 }
 0x342   : > { %1587 = vrot.lane.b32.xlu1 %v1492_v41, %s5155_s26  ;;  %1554 = vst.msk [vmem:[#allocation2 + $0x48] sm:$0xff] %vm531_vm3, %v1512_v49  ;;  %v1507_v59 = vadd.f32 %v5494_v31, %v1506_v51 }
 0x343   : > { %v4578_v60 = vpop.f32.mrf.mxu0 }
 0x344   : > { %1585 = vrot.lane.b32.xlu0 %v1487_v43, %s5155_s26  ;;  %1553 = vst.msk [vmem:[#allocation2 + $0x40] sm:$0xff] %vm531_vm3, %v1507_v59  ;;  %v1522_v61 = vadd.f32 %v4578_v60, %v5494_v31 }
 0x345   : > { %v1516_v62 = vpop.f32.mrf.mxu0 }
 0x346   : > { %1652 = vrot.lane.b32.xlu1 %v1492_v41, %s5156_s23  ;;  %1556 = vst.msk [vmem:[#allocation2 + $0x58] sm:$0xff] %vm531_vm3, %v1522_v61  ;;  %v1517_v63 = vadd.f32 %v5494_v31, %v1516_v62  ;;  %v1966_v41 = vadd.f32 %v5567_v36, %v1965_v38 }
 0x347   : > { %v4581_v0 = vpop.f32.mrf.mxu0 }
 0x348   : > { %1650 = vrot.lane.b32.xlu0 %v1487_v43, %s5156_s23  ;;  %1555 = vst.msk [vmem:[#allocation2 + $0x50] sm:$0xff] %vm531_vm3, %v1517_v63  ;;  %v1532_v1 = vadd.f32 %v4581_v0, %v5494_v31 }
 0x349   : > { %v1526_v2 = vpop.f32.mrf.mxu0 }
 0x34a   : > { %1591 = vrot.lane.b32.xlu1 %v1502_v45, %s5155_s26  ;;  %1558 = vst.msk [vmem:[#allocation2 + $0x68] sm:$0xff] %vm531_vm3, %v1532_v1  ;;  %v1527_v3 = vadd.f32 %v5494_v31, %v1526_v2 }
 0x34b   : > { %v4584_v4 = vpop.f32.mrf.mxu0  ;;  %v4899_v16 = vpop.eup %4898 }
 0x34c   : > { %1589 = vrot.lane.b32.xlu0 %v1497_v47, %s5155_s26  ;;  %1557 = vst.msk [vmem:[#allocation2 + $0x60] sm:$0xff] %vm531_vm3, %v1527_v3  ;;  %v1542_v5 = vadd.f32 %v4584_v4, %v5494_v31  ;;  %v1985_v18 = vadd.f32 1.0, %v4899_v16 }
 0x34d   : > { %v1536_v6 = vpop.f32.mrf.mxu0  ;;  %v4901_v17 = vpop.eup %4900 }
 0x34e   : > { %1656 = vrot.lane.b32.xlu1 %v1502_v45, %s5156_s23  ;;  %1560 = vst.msk [vmem:[#allocation2 + $0x78] sm:$0xff] %vm531_vm3, %v1542_v5  ;;  %v1537_v7 = vadd.f32 %v5494_v31, %v1536_v6  ;;  %v1984_v20 = vadd.f32 1.0, %v4901_v17  ;;  %4902 = vrcp.f32 %v1985_v18 }
 0x350   : > { %1654 = vrot.lane.b32.xlu0 %v1497_v47, %s5156_s23  ;;  %1559 = vst.msk [vmem:[#allocation2 + $0x70] sm:$0xff] %vm531_vm3, %v1537_v7  ;;  %4904 = vrcp.f32 %v1984_v20 }
 0x352   : > { %1595 = vrot.lane.b32.xlu1 %v1512_v49, %s5155_s26 }
 0x354   : > { %1593 = vrot.lane.b32.xlu0 %v1507_v59, %s5155_s26 }
 0x356   : > { %1660 = vrot.lane.b32.xlu1 %v1512_v49, %s5156_s23 }
 0x358   : > { %1658 = vrot.lane.b32.xlu0 %v1507_v59, %s5156_s23 }
 0x35a   : > { %1599 = vrot.lane.b32.xlu1 %v1522_v61, %s5155_s26 }
 0x35b   : > { %v4903_v40 = vpop.eup %4902 }
 0x35c   : > { %1597 = vrot.lane.b32.xlu0 %v1517_v63, %s5155_s26  ;;  %v2009_v44 = vmul.f32 %v4903_v40, %v1971_v39 }
 0x35d   : > { %v4905_v42 = vpop.eup %4904 }
 0x35e   : > { %1664 = vrot.lane.b32.xlu1 %v1522_v61, %s5156_s23  ;;  %v2008_v46 = vmul.f32 %v4905_v42, %v1966_v41  ;;  %v2252_v41 = vld [vmem:[#allocation2 + $0x18] sm:$0xff] }
 0x360   : > { %1662 = vrot.lane.b32.xlu0 %v1517_v63, %s5156_s23 }
 0x362   : > { %1603 = vrot.lane.b32.xlu1 %v1532_v1, %s5155_s26 }
 0x364   : > { %1601 = vrot.lane.b32.xlu0 %v1527_v3, %s5155_s26 }
 0x366   : > { %1668 = vrot.lane.b32.xlu1 %v1532_v1, %s5156_s23 }
 0x368   : > { %1666 = vrot.lane.b32.xlu0 %v1527_v3, %s5156_s23 }
 0x36a   : > { %1607 = vrot.lane.b32.xlu1 %v1542_v5, %s5155_s26 }
 0x36c   : > { %1605 = vrot.lane.b32.xlu0 %v1537_v7, %s5155_s26  ;;  %s5063_s26 = scalar_lea.vmem %s5912_s24, 256 }
 0x36d   : > { %p5064_p11 = scmp.ne.s32.totalorder %s5912_s24, %s5063_s26 }
 0x36e   : > { %1672 = vrot.lane.b32.xlu1 %v1542_v5, %s5156_s23 }
 0x36f   : > { %p5065_p12 = pnand %p5064_p11, %p5250_p5 }
 0x370   : > { %1670 = vrot.lane.b32.xlu0 %v1537_v7, %s5156_s23  ;;  %s5069_s23 = scalar_lea.vmem %s5068_s16, 512 }
 0x371   : > { %p5066_p13 = pneg %p5065_p12  ;;  %p5071_p1 = scmp.lt.s32.totalorder %s5069_s23, %s5063_s26 }
 0x373   : > { %p5072_p2 = por %p5071_p1, %p5070_p0 }
 0x375   : > { %p5073_p3 = pnand %p5072_p2, %p5066_p13 }
 0x3a4   : > { %v1580_v19 = vpop.permute.xlu1 %1579 }
 0x3a5   : > { %1627 = vst.msk [vmem:[#allocation2 + $0x88] sm:$0xff] %vm531_vm3, %v1580_v19 }
 0x3a6   : > { %v1578_v24 = vpop.permute.xlu0 %1577 }
 0x3a7   : > { %1626 = vst.msk [vmem:[#allocation2 + $0x80] sm:$0xff] %vm531_vm3, %v1578_v24 }
 0x3a8   : > { %v1645_v27 = vpop.permute.xlu1 %1644 }
 0x3a9   : > { %1692 = vst.msk [vmem:[#allocation2 + $0x108] sm:$0xff] %vm531_vm3, %v1645_v27 }
 0x3aa   : > { %v1643_v29 = vpop.permute.xlu0 %1642 }
 0x3ab   : > { %1691 = vst.msk [vmem:[#allocation2 + $0x100] sm:$0xff] %vm531_vm3, %v1643_v29 }
 0x3ac   : > { %v1991_v30 = vld [vmem:[#allocation2 + $0x88] sm:$0xff]  ;;  %v1584_v7 = vpop.permute.xlu1 %1583 }
 0x3ad   : > { %v1993_v31 = vadd.f32 %v4606_v21, %v1991_v30  ;;  %1629 = vst.msk [vmem:[#allocation2 + $0x98] sm:$0xff] %vm531_vm3, %v1584_v7 }
 0x3ae   : > { %v1990_v33 = vld [vmem:[#allocation2 + $0x80] sm:$0xff]  ;;  %v1582_v8 = vpop.permute.xlu0 %1581 }
 0x3af   : > { %v1992_v34 = vadd.f32 %v1990_v33, %v1872_v28  ;;  %v4157_v35 = vmul.f32 -1.442695, %v1993_v31  ;;  %1628 = vst.msk [vmem:[#allocation2 + $0x90] sm:$0xff] %vm531_vm3, %v1582_v8 }
 0x3b0   : > { %v2007_v43 = vld [vmem:[#allocation2 + $0x108] sm:$0xff]  ;;  %v1649_v9 = vpop.permute.xlu1 %1648 }
 0x3b1   : > { %v4156_v37 = vmul.f32 -1.442695, %v1992_v34  ;;  %4906 = vpow2.f32 %v4157_v35  ;;  %v2011_v47 = vadd.f32 %v2009_v44, %v2007_v43  ;;  %1694 = vst.msk [vmem:[#allocation2 + $0x118] sm:$0xff] %vm531_vm3, %v1649_v9  ;;  %v2251_v44 = vld [vmem:[#allocation2 + $0x10] sm:$0xff] }
 0x3b2   : > { %v2006_v45 = vld [vmem:[#allocation2 + $0x100] sm:$0xff]  ;;  %v1647_v10 = vpop.permute.xlu0 %1646 }
 0x3b3   : > { %4908 = vpow2.f32 %v4156_v37  ;;  %v2010_v48 = vadd.f32 %v2008_v46, %v2006_v45  ;;  %1693 = vst.msk [vmem:[#allocation2 + $0x110] sm:$0xff] %vm531_vm3, %v1647_v10 }
 0x3b4   : > { %4910 = vtanh.f32 %v2011_v47  ;;  %v1588_v11 = vpop.permute.xlu1 %1587 }
 0x3b5   : > { %4912 = vtanh.f32 %v2010_v48  ;;  %1631 = vst.msk [vmem:[#allocation2 + $0xa8] sm:$0xff] %vm531_vm3, %v1588_v11 }
 0x3b6   : > { %v1586_v12 = vpop.permute.xlu0 %1585 }
 0x3b7   : > { %1630 = vst.msk [vmem:[#allocation2 + $0xa0] sm:$0xff] %vm531_vm3, %v1586_v12 }
 0x3b8   : > { %v1653_v13 = vpop.permute.xlu1 %1652 }
 0x3b9   : > { %1696 = vst.msk [vmem:[#allocation2 + $0x128] sm:$0xff] %vm531_vm3, %v1653_v13 }
 0x3ba   : > { %v1651_v14 = vpop.permute.xlu0 %1650 }
 0x3bb   : > { %1695 = vst.msk [vmem:[#allocation2 + $0x120] sm:$0xff] %vm531_vm3, %v1651_v14 }
 0x3bc   : > { %v1592_v15 = vpop.permute.xlu1 %1591 }
 0x3bd   : > { %1633 = vst.msk [vmem:[#allocation2 + $0xb8] sm:$0xff] %vm531_vm3, %v1592_v15  ;;  %v2284_v15 = vld [vmem:[#allocation2 + $0x118] sm:$0xff] }
 0x3be   : > { %v4907_v49 = vpop.eup %4906  ;;  %v1590_v16 = vpop.permute.xlu0 %1589 }
 0x3bf   : > { %v2001_v51 = vadd.f32 1.0, %v4907_v49  ;;  %1632 = vst.msk [vmem:[#allocation2 + $0xb0] sm:$0xff] %vm531_vm3, %v1590_v16  ;;  %v2268_v49 = vld [vmem:[#allocation2 + $0x98] sm:$0xff] }
 0x3c0   : > { %v4909_v59 = vpop.eup %4908  ;;  %v1657_v17 = vpop.permute.xlu1 %1656 }
 0x3c1   : > { %v2000_v60 = vadd.f32 1.0, %v4909_v59  ;;  %4914 = vrcp.f32 %v2001_v51  ;;  %v4911_v61 = vpop.eup %4910  ;;  %1698 = vst.msk [vmem:[#allocation2 + $0x138] sm:$0xff] %vm531_vm3, %v1657_v17  ;;  %v2267_v59 = vld [vmem:[#allocation2 + $0x90] sm:$0xff] }
 0x3c2   : > { %v4913_v62 = vpop.eup %4912  ;;  %v2015_v0 = vsub.f32 0.0, %v4911_v61  ;;  %v1655_v18 = vpop.permute.xlu0 %1654 }
 0x3c3   : > { %4916 = vrcp.f32 %v2000_v60  ;;  %v2014_v1 = vsub.f32 0.0, %v4913_v62  ;;  %1697 = vst.msk [vmem:[#allocation2 + $0x130] sm:$0xff] %vm531_vm3, %v1655_v18 }
 0x3c4   : > { %v1596_v19 = vpop.permute.xlu1 %1595 }
 0x3c5   : > { %1635 = vst.msk [vmem:[#allocation2 + $0xc8] sm:$0xff] %vm531_vm3, %v1596_v19  ;;  %v2283_v19 = vld [vmem:[#allocation2 + $0x110] sm:$0xff] }
 0x3c6   : > { %v1594_v20 = vpop.permute.xlu0 %1593 }
 0x3c7   : > { %1634 = vst.msk [vmem:[#allocation2 + $0xc0] sm:$0xff] %vm531_vm3, %v1594_v20 }
 0x3c8   : > { %v1661_v21 = vpop.permute.xlu1 %1660 }
 0x3c9   : > { %1700 = vst.msk [vmem:[#allocation2 + $0x148] sm:$0xff] %vm531_vm3, %v1661_v21 }
 0x3ca   : > { %v1659_v24 = vpop.permute.xlu0 %1658 }
 0x3cb   : > { %1699 = vst.msk [vmem:[#allocation2 + $0x140] sm:$0xff] %vm531_vm3, %v1659_v24 }
 0x3cc   : > { %v1600_v27 = vpop.permute.xlu1 %1599 }
 0x3cd   : > { %1637 = vst.msk [vmem:[#allocation2 + $0xd8] sm:$0xff] %vm531_vm3, %v1600_v27 }
 0x3ce   : > { %v4915_v63 = vpop.eup %4914  ;;  %v1598_v28 = vpop.permute.xlu0 %1597 }
 0x3cf   : > { %v2017_v3 = vmul.f32 %v4915_v63, %v2015_v0  ;;  %1636 = vst.msk [vmem:[#allocation2 + $0xd0] sm:$0xff] %vm531_vm3, %v1598_v28 }
 0x3d0   : > { %v4917_v2 = vpop.eup %4916  ;;  %v1665_v29 = vpop.permute.xlu1 %1664 }
 0x3d1   : > { %v2016_v4 = vmul.f32 %v4917_v2, %v2014_v1  ;;  %v5573_v6 = vadd.f32 %v4911_v61, %v2017_v3  ;;  %1702 = vst.msk [vmem:[#allocation2 + $0x158] sm:$0xff] %vm531_vm3, %v1665_v29 }
 0x3d2   : > { %v1663_v30 = vpop.permute.xlu0 %1662 }
 0x3d3   : > { %v5571_v5 = vadd.f32 %v4913_v62, %v2016_v4  ;;  %1701 = vst.msk [vmem:[#allocation2 + $0x150] sm:$0xff] %vm531_vm3, %v1663_v30 }
 0x3d4   : > { %v1604_v31 = vpop.permute.xlu1 %1603 }
 0x3d5   : > { %4626 = vmatprep.mubr.msk.f32.mxu1 %vm531_vm3, %v5571_v5  ;;  %4637 = vmatprep.mubr.msk.f32.mxu0 %vm531_vm3, %v5571_v5  ;;  %1639 = vst.msk [vmem:[#allocation2 + $0xe8] sm:$0xff] %vm531_vm3, %v1604_v31 }
 0x3d6   : > { %4627 = vmatmul.mubr.msk.f32.vlgmr.msra.gmra.mxu1 %vm531_vm3, %v5573_v6  ;;  %4638 = vmatmul.mubr.msk.f32.vlgmr.msra.gmra.mxu0 %vm531_vm3, %v5573_v6  ;;  %v1602_v32 = vpop.permute.xlu0 %1601 }
 0x3d7   : > { %4641 = vmatpush3.msra.mxu1 %v5438_v55  ;;  %4652 = vmatpush3.msra.mxu0 %v5329_v22  ;;  %1638 = vst.msk [vmem:[#allocation2 + $0xe0] sm:$0xff] %vm531_vm3, %v1602_v32 }
 0x3d8   : > { %4642 = vmatprep.subr.mxu1 %v5442_v56  ;;  %4648 = vmatprep.mubr.msk.f32.mxu1 %vm531_vm3, %v5571_v5  ;;  %v1669_v33 = vpop.permute.xlu1 %1668 }
 0x3d9   : > { %4653 = vmatprep.subr.mxu0 %v5346_v25  ;;  %4643 = vmatpush3.msra.mxu1 %v5442_v56  ;;  %1704 = vst.msk [vmem:[#allocation2 + $0x168] sm:$0xff] %vm531_vm3, %v1669_v33 }
 0x3da   : > { %4654 = vmatpush3.msra.mxu0 %v5346_v25  ;;  %4644 = vmatprep.subr.mxu1 %v5448_v57  ;;  %v1667_v34 = vpop.permute.xlu0 %1666 }
 0x3db   : > { %4655 = vmatprep.subr.mxu0 %v5334_v23  ;;  %4645 = vmatpush3.msra.mxu1 %v5448_v57  ;;  %1703 = vst.msk [vmem:[#allocation2 + $0x160] sm:$0xff] %vm531_vm3, %v1667_v34 }
 0x3dc   : > { %4656 = vmatpush3.msra.mxu0 %v5334_v23  ;;  %4646 = vmatprep.subr.mxu1 %v5452_v58  ;;  %v1608_v35 = vpop.permute.xlu1 %1607 }
 0x3dd   : > { %4657 = vmatprep.subr.mxu0 %v5351_v26  ;;  %4647 = vmatpush3.msra.mxu1 %v5452_v58  ;;  %1641 = vst.msk [vmem:[#allocation2 + $0xf8] sm:$0xff] %vm531_vm3, %v1608_v35 }
 0x3de   : > { %4658 = vmatpush3.msra.mxu0 %v5351_v26  ;;  %4649 = vmatmul.mubr.msk.f32.vlgmr.msra.gmra.mxu1 %vm531_vm3, %v5573_v6  ;;  %v1606_v37 = vpop.permute.xlu0 %1605 }
 0x3df   : > { %4662 = vmatprep.subr.mxu1 %v5415_v50  ;;  %4673 = vmatprep.subr.mxu0 %v5438_v55  ;;  %1640 = vst.msk [vmem:[#allocation2 + $0xf0] sm:$0xff] %vm531_vm3, %v1606_v37 }
 0x3e0   : > { %4663 = vmatpush3.msra.mxu1 %v5415_v50  ;;  %v1673_v38 = vpop.permute.xlu1 %1672 }
 0x3e1   : > { %4664 = vmatprep.subr.mxu1 %v5430_v53  ;;  %1706 = vst.msk [vmem:[#allocation2 + $0x178] sm:$0xff] %vm531_vm3, %v1673_v38 }
 0x3e2   : > { %4665 = vmatpush3.msra.mxu1 %v5430_v53  ;;  %v1671_v39 = vpop.permute.xlu0 %1670 }
 0x3e3   : > { %4666 = vmatprep.subr.mxu1 %v5422_v52  ;;  %1705 = vst.msk [vmem:[#allocation2 + $0x170] sm:$0xff] %vm531_vm3, %v1671_v39 }
 0x3e4   : > { %4667 = vmatpush3.msra.mxu1 %v5422_v52 }
 0x3e5   : > { %4668 = vmatprep.subr.mxu1 %v5432_v54 }
 0x3e6   : > { %4669 = vmatpush3.msra.mxu1 %v5432_v54 }
 0x3e7   : > { %4684 = vmatprep.subr.mxu1 %v5329_v22 }
 0x496   : > { %v4628_v40 = vpop.f32.mrf.mxu1  ;;  %v4639_v48 = vpop.f32.mrf.mxu0 }
 0x497   : > { %v2254_v42 = vadd.f32 %v4628_v40, %v2252_v41  ;;  %v2270_v60 = vadd.f32 %v4639_v48, %v2268_v49  ;;  %v2545_v41 = vld [vmem:[#allocation2 + $0xa8] sm:$0xff] }
 0x498   : > { %v2092_v43 = vpop.f32.mrf.mxu1  ;;  %v2167_v51 = vpop.f32.mrf.mxu0 }
 0x499   : > { %v4165_v45 = vmul.f32 -1.442695, %v2254_v42  ;;  %v2253_v46 = vadd.f32 %v2251_v44, %v2092_v43  ;;  %v2269_v61 = vadd.f32 %v2267_v59, %v2167_v51  ;;  %v4167_v62 = vmul.f32 -1.442695, %v2270_v60  ;;  %v2544_v44 = vld [vmem:[#allocation2 + $0xa0] sm:$0xff] }
 0x49b   : > { %4918 = vpow2.f32 %v4165_v45  ;;  %v4164_v47 = vmul.f32 -1.442695, %v2253_v46  ;;  %v4166_v0 = vmul.f32 -1.442695, %v2269_v61 }
 0x49d   : > { %4920 = vpow2.f32 %v4164_v47 }
 0x49e   : > { %4922 = vpow2.f32 %v4167_v62  ;;  %v4650_v4 = vpop.f32.mrf.mxu1 }
 0x49f   : > { %v2248_v9 = vadd.f32 %v4650_v4, %v5567_v36 }
 0x4a0   : > { %v2242_v7 = vpop.f32.mrf.mxu1 }
 0x4a1   : > { %v2243_v13 = vadd.f32 %v5567_v36, %v2242_v7  ;;  %v2561_v7 = vld [vmem:[#allocation2 + $0x128] sm:$0xff] }
 0x4a8   : > { %v4919_v63 = vpop.eup %4918 }
 0x4a9   : > { %v2262_v1 = vadd.f32 1.0, %v4919_v63 }
 0x4aa   : > { %v4921_v2 = vpop.eup %4920 }
 0x4ab   : > { %4924 = vrcp.f32 %v2262_v1  ;;  %v2261_v3 = vadd.f32 1.0, %v4921_v2  ;;  %v4923_v8 = vpop.eup %4922 }
 0x4ac   : > { %4926 = vpow2.f32 %v4166_v0  ;;  %v2278_v18 = vadd.f32 1.0, %v4923_v8 }
 0x4ad   : > { %4928 = vrcp.f32 %v2261_v3 }
 0x4b8   : > { %v4925_v10 = vpop.eup %4924 }
 0x4b9   : > { %v4927_v11 = vpop.eup %4926  ;;  %v2286_v12 = vmul.f32 %v4925_v10, %v2248_v9 }
 0x4ba   : > { %v4929_v14 = vpop.eup %4928  ;;  %v2277_v20 = vadd.f32 1.0, %v4927_v11  ;;  %v2560_v11 = vld [vmem:[#allocation2 + $0x120] sm:$0xff] }
 0x4bb   : > { %v2288_v16 = vadd.f32 %v2286_v12, %v2284_v15  ;;  %v2285_v17 = vmul.f32 %v4929_v14, %v2243_v13 }
 0x4bd   : > { %4930 = vtanh.f32 %v2288_v16  ;;  %v2287_v21 = vadd.f32 %v2285_v17, %v2283_v19 }
 0x4bf   : > { %4932 = vtanh.f32 %v2287_v21 }
 0x4c0   : > { %4934 = vrcp.f32 %v2278_v18 }
 0x4c1   : > { %4936 = vrcp.f32 %v2277_v20 }
 0x4ca   : > { %v4931_v24 = vpop.eup %4930 }
 0x4cb   : > { %v2292_v27 = vsub.f32 %v5573_v6, %v4931_v24  ;;  %v2528_v6 = vld [vmem:[#allocation2 + $0x20] sm:$0xff] }
 0x4cc   : > { %v4933_v28 = vpop.eup %4932 }
 0x4cd   : > { %v4935_v29 = vpop.eup %4934  ;;  %v2291_v30 = vsub.f32 %v5571_v5, %v4933_v28 }
 0x4ce   : > { %v4937_v31 = vpop.eup %4936  ;;  %v2294_v32 = vmul.f32 %v4935_v29, %v2292_v27  ;;  %v5721_v29 = vld [vmem:[%s6011_s6 + $0x8] sm:$0xff] }
 0x4cf   : > { %v2293_v33 = vmul.f32 %v4937_v31, %v2291_v30  ;;  %v5730_v30 = vld [vmem:[%s6011_s6] sm:$0xff] }
 0x4d0   : > { %v5645_v35 = vadd.f32 %v4931_v24, %v2294_v32  ;;  %v2806_v32 = vld [vmem:[#allocation2 + $0x38] sm:$0xff] }
 0x4d1   : > { %v5643_v34 = vadd.f32 %v4933_v28, %v2293_v33  ;;  %v5712_v28 = vld [vmem:[%s6011_s6 + $0x10] sm:$0xff] }
 0x4d3   : > { %4659 = vmatprep.mubr.msk.f32.mxu0 %vm531_vm3, %v5643_v34  ;;  %4670 = vmatprep.mubr.msk.f32.mxu1 %vm531_vm3, %v5643_v34 }
 0x4d4   : > { %4660 = vmatmul.mubr.msk.f32.vlgmr.msra.gmra.mxu0 %vm531_vm3, %v5645_v35  ;;  %4671 = vmatmul.mubr.msk.f32.vlgmr.msra.gmra.mxu1 %vm531_vm3, %v5645_v35 }
 0x4d5   : > { %4674 = vmatpush3.msra.mxu0 %v5438_v55  ;;  %4685 = vmatpush3.msra.mxu1 %v5329_v22  ;;  %v5685_v22 = vld [vmem:[%s6011_s6 + $0x18] sm:$0xff] }
 0x4d6   : > { %4675 = vmatprep.subr.mxu0 %v5442_v56  ;;  %4681 = vmatprep.mubr.msk.f32.mxu0 %vm531_vm3, %v5643_v34 }
 0x4d7   : > { %4686 = vmatprep.subr.mxu1 %v5346_v25  ;;  %4676 = vmatpush3.msra.mxu0 %v5442_v56 }
 0x4d8   : > { %4687 = vmatpush3.msra.mxu1 %v5346_v25  ;;  %4677 = vmatprep.subr.mxu0 %v5448_v57  ;;  %v2529_v25 = vld [vmem:[#allocation2 + $0x28] sm:$0xff] }
 0x4d9   : > { %4688 = vmatprep.subr.mxu1 %v5334_v23  ;;  %4678 = vmatpush3.msra.mxu0 %v5448_v57 }
 0x4da   : > { %4689 = vmatpush3.msra.mxu1 %v5334_v23  ;;  %4679 = vmatprep.subr.mxu0 %v5452_v58 }
 0x4db   : > { %4690 = vmatprep.subr.mxu1 %v5351_v26  ;;  %4680 = vmatpush3.msra.mxu0 %v5452_v58 }
 0x4dc   : > { %4691 = vmatpush3.msra.mxu1 %v5351_v26  ;;  %4682 = vmatmul.mubr.msk.f32.vlgmr.msra.gmra.mxu0 %vm531_vm3, %v5645_v35 }
 0x4dd   : > { %4695 = vmatprep.subr.mxu0 %v5415_v50  ;;  %4706 = vmatprep.subr.mxu1 %v5438_v55 }
 0x4de   : > { %4696 = vmatpush3.msra.mxu0 %v5415_v50 }
 0x4df   : > { %4697 = vmatprep.subr.mxu0 %v5430_v53 }
 0x4e0   : > { %4698 = vmatpush3.msra.mxu0 %v5430_v53 }
 0x4e1   : > { %4699 = vmatprep.subr.mxu0 %v5422_v52 }
 0x4e2   : > { %4700 = vmatpush3.msra.mxu0 %v5422_v52 }
 0x4e3   : > { %4701 = vmatprep.subr.mxu0 %v5432_v54 }
 0x4e4   : > { %4702 = vmatpush3.msra.mxu0 %v5432_v54 }
 0x4e5   : > { %4717 = vmatprep.subr.mxu0 %v5685_v22 }
 0x594   : > { %v4661_v23 = vpop.f32.mrf.mxu0  ;;  %v4672_v40 = vpop.f32.mrf.mxu1 }
 0x595   : > { %v2531_v26 = vadd.f32 %v4661_v23, %v2529_v25  ;;  %v2547_v43 = vadd.f32 %v4672_v40, %v2545_v41 }
 0x596   : > { %v2369_v5 = vpop.f32.mrf.mxu0  ;;  %v2444_v42 = vpop.f32.mrf.mxu1 }
 0x597   : > { %v4175_v37 = vmul.f32 -1.442695, %v2531_v26  ;;  %v2530_v38 = vadd.f32 %v2528_v6, %v2369_v5  ;;  %v2546_v45 = vadd.f32 %v2544_v44, %v2444_v42  ;;  %v4177_v46 = vmul.f32 -1.442695, %v2547_v43  ;;  %v2822_v6 = vld [vmem:[#allocation2 + $0xb8] sm:$0xff] }
 0x599   : > { %4938 = vpow2.f32 %v4175_v37  ;;  %v4174_v39 = vmul.f32 -1.442695, %v2530_v38  ;;  %v4176_v48 = vmul.f32 -1.442695, %v2546_v45 }
 0x59b   : > { %4940 = vpow2.f32 %v4174_v39  ;;  %v2821_v39 = vld [vmem:[#allocation2 + $0xb0] sm:$0xff] }
 0x59c   : > { %4942 = vpow2.f32 %v4177_v46  ;;  %v4683_v60 = vpop.f32.mrf.mxu0 }
 0x59d   : > { %v2525_v63 = vadd.f32 %v4683_v60, %v5567_v36 }
 0x59e   : > { %v2519_v61 = vpop.f32.mrf.mxu0 }
 0x59f   : > { %v2520_v3 = vadd.f32 %v5567_v36, %v2519_v61 }
 0x5a6   : > { %v4939_v47 = vpop.eup %4938 }
 0x5a7   : > { %v2539_v49 = vadd.f32 1.0, %v4939_v47 }
 0x5a8   : > { %v4941_v51 = vpop.eup %4940 }
 0x5a9   : > { %4944 = vrcp.f32 %v2539_v49  ;;  %v2538_v59 = vadd.f32 1.0, %v4941_v51  ;;  %v4943_v62 = vpop.eup %4942 }
 0x5aa   : > { %4946 = vpow2.f32 %v4176_v48  ;;  %v2555_v10 = vadd.f32 1.0, %v4943_v62 }
 0x5ab   : > { %4948 = vrcp.f32 %v2538_v59 }
 0x5b6   : > { %v4945_v0 = vpop.eup %4944 }
 0x5b7   : > { %v4947_v1 = vpop.eup %4946  ;;  %v2563_v2 = vmul.f32 %v4945_v0, %v2525_v63  ;;  %v2838_v0 = vld [vmem:[#allocation2 + $0x138] sm:$0xff] }
 0x5b8   : > { %v4949_v4 = vpop.eup %4948  ;;  %v2554_v12 = vadd.f32 1.0, %v4947_v1 }
 0x5b9   : > { %v2565_v8 = vadd.f32 %v2563_v2, %v2561_v7  ;;  %v2562_v9 = vmul.f32 %v4949_v4, %v2520_v3  ;;  %v2837_v4 = vld [vmem:[#allocation2 + $0x130] sm:$0xff] }
 0x5bb   : > { %4950 = vtanh.f32 %v2565_v8  ;;  %v2564_v13 = vadd.f32 %v2562_v9, %v2560_v11 }
 0x5bd   : > { %4952 = vtanh.f32 %v2564_v13 }
 0x5be   : > { %4954 = vrcp.f32 %v2555_v10 }
 0x5bf   : > { %4956 = vrcp.f32 %v2554_v12 }
 0x5c8   : > { %v4951_v14 = vpop.eup %4950 }
 0x5c9   : > { %v2569_v15 = vsub.f32 %v5645_v35, %v4951_v14  ;;  %v2805_v35 = vld [vmem:[#allocation2 + $0x30] sm:$0xff] }
 0x5ca   : > { %v4953_v16 = vpop.eup %4952 }
 0x5cb   : > { %v4955_v17 = vpop.eup %4954  ;;  %v2568_v18 = vsub.f32 %v5643_v34, %v4953_v16 }
 0x5cc   : > { %v4957_v19 = vpop.eup %4956  ;;  %v2571_v20 = vmul.f32 %v4955_v17, %v2569_v15 }
 0x5cd   : > { %v2570_v21 = vmul.f32 %v4957_v19, %v2568_v18 }
 0x5ce   : > { %v5694_v27 = vadd.f32 %v4951_v14, %v2571_v20  ;;  %v3083_v20 = vld [vmem:[#allocation2 + $0x48] sm:$0xff] }
 0x5cf   : > { %v5692_v24 = vadd.f32 %v4953_v16, %v2570_v21 }
 0x5d1   : > { %4692 = vmatprep.mubr.msk.f32.mxu1 %vm531_vm3, %v5692_v24  ;;  %4703 = vmatprep.mubr.msk.f32.mxu0 %vm531_vm3, %v5692_v24 }
 0x5d2   : > { %4693 = vmatmul.mubr.msk.f32.vlgmr.msra.gmra.mxu1 %vm531_vm3, %v5694_v27  ;;  %4704 = vmatmul.mubr.msk.f32.vlgmr.msra.gmra.mxu0 %vm531_vm3, %v5694_v27 }
 0x5d3   : > { %4707 = vmatpush3.msra.mxu1 %v5438_v55  ;;  %4718 = vmatpush3.msra.mxu0 %v5685_v22 }
 0x5d4   : > { %4708 = vmatprep.subr.mxu1 %v5442_v56  ;;  %4714 = vmatprep.mubr.msk.f32.mxu1 %vm531_vm3, %v5692_v24 }
 0x5d5   : > { %4719 = vmatprep.subr.mxu0 %v5712_v28  ;;  %4709 = vmatpush3.msra.mxu1 %v5442_v56 }
 0x5d6   : > { %4720 = vmatpush3.msra.mxu0 %v5712_v28  ;;  %4710 = vmatprep.subr.mxu1 %v5448_v57 }
 0x5d7   : > { %4721 = vmatprep.subr.mxu0 %v5721_v29  ;;  %4711 = vmatpush3.msra.mxu1 %v5448_v57 }
 0x5d8   : > { %4722 = vmatpush3.msra.mxu0 %v5721_v29  ;;  %4712 = vmatprep.subr.mxu1 %v5452_v58 }
 0x5d9   : > { %4723 = vmatprep.subr.mxu0 %v5730_v30  ;;  %4713 = vmatpush3.msra.mxu1 %v5452_v58 }
 0x5da   : > { %4724 = vmatpush3.msra.mxu0 %v5730_v30  ;;  %4715 = vmatmul.mubr.msk.f32.vlgmr.msra.gmra.mxu1 %vm531_vm3, %v5694_v27 }
 0x5db   : > { %4728 = vmatprep.subr.mxu1 %v5415_v50  ;;  %4739 = vmatprep.subr.mxu0 %v5438_v55 }
 0x5dc   : > { %4729 = vmatpush3.msra.mxu1 %v5415_v50 }
 0x5dd   : > { %4730 = vmatprep.subr.mxu1 %v5430_v53 }
 0x5de   : > { %4731 = vmatpush3.msra.mxu1 %v5430_v53 }
 0x5df   : > { %4732 = vmatprep.subr.mxu1 %v5422_v52 }
 0x5e0   : > { %4733 = vmatpush3.msra.mxu1 %v5422_v52 }
 0x5e1   : > { %4734 = vmatprep.subr.mxu1 %v5432_v54 }
 0x5e2   : > { %4735 = vmatpush3.msra.mxu1 %v5432_v54 }
 0x5e3   : > { %4750 = vmatprep.subr.mxu1 %v5685_v22 }
 0x692   : > { %v4694_v31 = vpop.f32.mrf.mxu1  ;;  %v4705_v5 = vpop.f32.mrf.mxu0 }
 0x693   : > { %v2808_v33 = vadd.f32 %v4694_v31, %v2806_v32  ;;  %v2824_v38 = vadd.f32 %v4705_v5, %v2822_v6 }
 0x694   : > { %v2646_v34 = vpop.f32.mrf.mxu1  ;;  %v2721_v37 = vpop.f32.mrf.mxu0 }
 0x695   : > { %v4185_v23 = vmul.f32 -1.442695, %v2808_v33  ;;  %v2807_v25 = vadd.f32 %v2805_v35, %v2646_v34  ;;  %v2823_v40 = vadd.f32 %v2821_v39, %v2721_v37  ;;  %v4187_v41 = vmul.f32 -1.442695, %v2824_v38  ;;  %v3099_v35 = vld [vmem:[#allocation2 + $0xc8] sm:$0xff] }
 0x697   : > { %4958 = vpow2.f32 %v4185_v23  ;;  %v4184_v26 = vmul.f32 -1.442695, %v2807_v25  ;;  %v4186_v43 = vmul.f32 -1.442695, %v2823_v40 }
 0x699   : > { %4960 = vpow2.f32 %v4184_v26  ;;  %v3098_v26 = vld [vmem:[#allocation2 + $0xc0] sm:$0xff] }
 0x69a   : > { %4962 = vpow2.f32 %v4187_v41  ;;  %v4716_v47 = vpop.f32.mrf.mxu1 }
 0x69b   : > { %v2802_v51 = vadd.f32 %v4716_v47, %v5567_v36 }
 0x69c   : > { %v2796_v48 = vpop.f32.mrf.mxu1 }
 0x69d   : > { %v2797_v62 = vadd.f32 %v5567_v36, %v2796_v48 }
 0x6a4   : > { %v4959_v42 = vpop.eup %4958 }
 0x6a5   : > { %v2816_v44 = vadd.f32 1.0, %v4959_v42 }
 0x6a6   : > { %v4961_v45 = vpop.eup %4960 }
 0x6a7   : > { %4964 = vrcp.f32 %v2816_v44  ;;  %v2815_v46 = vadd.f32 1.0, %v4961_v45  ;;  %v4963_v49 = vpop.eup %4962 }
 0x6a8   : > { %4966 = vpow2.f32 %v4186_v43  ;;  %v2832_v3 = vadd.f32 1.0, %v4963_v49 }
 0x6a9   : > { %4968 = vrcp.f32 %v2815_v46 }
 0x6b4   : > { %v4965_v59 = vpop.eup %4964 }
 0x6b5   : > { %v4967_v60 = vpop.eup %4966  ;;  %v2840_v61 = vmul.f32 %v4965_v59, %v2802_v51  ;;  %v3115_v59 = vld [vmem:[#allocation2 + $0x148] sm:$0xff] }
 0x6b6   : > { %v4969_v63 = vpop.eup %4968  ;;  %v2831_v7 = vadd.f32 1.0, %v4967_v60 }
 0x6b7   : > { %v2842_v1 = vadd.f32 %v2840_v61, %v2838_v0  ;;  %v2839_v2 = vmul.f32 %v4969_v63, %v2797_v62  ;;  %v3114_v63 = vld [vmem:[#allocation2 + $0x140] sm:$0xff] }
 0x6b9   : > { %4970 = vtanh.f32 %v2842_v1  ;;  %v2841_v8 = vadd.f32 %v2839_v2, %v2837_v4 }
 0x6bb   : > { %4972 = vtanh.f32 %v2841_v8 }
 0x6bc   : > { %4974 = vrcp.f32 %v2832_v3 }
 0x6bd   : > { %4976 = vrcp.f32 %v2831_v7 }
 0x6c6   : > { %v4971_v9 = vpop.eup %4970 }
 0x6c7   : > { %v2846_v10 = vsub.f32 %v5694_v27, %v4971_v9  ;;  %v3082_v27 = vld [vmem:[#allocation2 + $0x40] sm:$0xff] }
 0x6c8   : > { %v4973_v11 = vpop.eup %4972 }
 0x6c9   : > { %v4975_v12 = vpop.eup %4974  ;;  %v2845_v13 = vsub.f32 %v5692_v24, %v4973_v11 }
 0x6ca   : > { %v4977_v14 = vpop.eup %4976  ;;  %v2848_v15 = vmul.f32 %v4975_v12, %v2846_v10 }
 0x6cb   : > { %v2847_v16 = vmul.f32 %v4977_v14, %v2845_v13 }
 0x6cc   : > { %v5753_v18 = vadd.f32 %v4971_v9, %v2848_v15  ;;  %v3360_v15 = vld [vmem:[#allocation2 + $0x58] sm:$0xff] }
 0x6cd   : > { %v5751_v17 = vadd.f32 %v4973_v11, %v2847_v16 }
 0x6cf   : > { %4725 = vmatprep.mubr.msk.f32.mxu0 %vm531_vm3, %v5751_v17  ;;  %4736 = vmatprep.mubr.msk.f32.mxu1 %vm531_vm3, %v5751_v17 }
 0x6d0   : > { %4726 = vmatmul.mubr.msk.f32.vlgmr.msra.gmra.mxu0 %vm531_vm3, %v5753_v18  ;;  %4737 = vmatmul.mubr.msk.f32.vlgmr.msra.gmra.mxu1 %vm531_vm3, %v5753_v18 }
 0x6d1   : > { %4740 = vmatpush3.msra.mxu0 %v5438_v55  ;;  %4751 = vmatpush3.msra.mxu1 %v5685_v22 }
 0x6d2   : > { %4741 = vmatprep.subr.mxu0 %v5442_v56  ;;  %4747 = vmatprep.mubr.msk.f32.mxu0 %vm531_vm3, %v5751_v17 }
 0x6d3   : > { %4752 = vmatprep.subr.mxu1 %v5712_v28  ;;  %4742 = vmatpush3.msra.mxu0 %v5442_v56 }
 0x6d4   : > { %4753 = vmatpush3.msra.mxu1 %v5712_v28  ;;  %4743 = vmatprep.subr.mxu0 %v5448_v57 }
 0x6d5   : > { %4754 = vmatprep.subr.mxu1 %v5721_v29  ;;  %4744 = vmatpush3.msra.mxu0 %v5448_v57 }
 0x6d6   : > { %4755 = vmatpush3.msra.mxu1 %v5721_v29  ;;  %4745 = vmatprep.subr.mxu0 %v5452_v58 }
 0x6d7   : > { %4756 = vmatprep.subr.mxu1 %v5730_v30  ;;  %4746 = vmatpush3.msra.mxu0 %v5452_v58 }
 0x6d8   : > { %4757 = vmatpush3.msra.mxu1 %v5730_v30  ;;  %4748 = vmatmul.mubr.msk.f32.vlgmr.msra.gmra.mxu0 %vm531_vm3, %v5753_v18 }
 0x6d9   : > { %4761 = vmatprep.subr.mxu0 %v5415_v50  ;;  %4772 = vmatprep.subr.mxu1 %v5438_v55 }
 0x6da   : > { %4762 = vmatpush3.msra.mxu0 %v5415_v50 }
 0x6db   : > { %4763 = vmatprep.subr.mxu0 %v5430_v53 }
 0x6dc   : > { %4764 = vmatpush3.msra.mxu0 %v5430_v53 }
 0x6dd   : > { %4765 = vmatprep.subr.mxu0 %v5422_v52 }
 0x6de   : > { %4766 = vmatpush3.msra.mxu0 %v5422_v52 }
 0x6df   : > { %4767 = vmatprep.subr.mxu0 %v5432_v54 }
 0x6e0   : > { %4768 = vmatpush3.msra.mxu0 %v5432_v54 }
 0x6e1   : > { %4783 = vmatprep.subr.mxu0 %v5685_v22 }
 0x790   : > { %v4727_v19 = vpop.f32.mrf.mxu0  ;;  %v4738_v34 = vpop.f32.mrf.mxu1 }
 0x791   : > { %v3085_v21 = vadd.f32 %v4727_v19, %v3083_v20  ;;  %v3101_v25 = vadd.f32 %v4738_v34, %v3099_v35 }
 0x792   : > { %v2923_v24 = vpop.f32.mrf.mxu0  ;;  %v2998_v23 = vpop.f32.mrf.mxu1 }
 0x793   : > { %v4195_v31 = vmul.f32 -1.442695, %v3085_v21  ;;  %v3084_v32 = vadd.f32 %v3082_v27, %v2923_v24  ;;  %v3100_v5 = vadd.f32 %v3098_v26, %v2998_v23  ;;  %v4197_v6 = vmul.f32 -1.442695, %v3101_v25  ;;  %v3376_v27 = vld [vmem:[#allocation2 + $0xd8] sm:$0xff] }
 0x795   : > { %4978 = vpow2.f32 %v4195_v31  ;;  %v4194_v33 = vmul.f32 -1.442695, %v3084_v32  ;;  %v4196_v38 = vmul.f32 -1.442695, %v3100_v5 }
 0x797   : > { %4980 = vpow2.f32 %v4194_v33  ;;  %v3375_v33 = vld [vmem:[#allocation2 + $0xd0] sm:$0xff] }
 0x798   : > { %4982 = vpow2.f32 %v4197_v6  ;;  %v4749_v42 = vpop.f32.mrf.mxu0 }
 0x799   : > { %v3079_v45 = vadd.f32 %v4749_v42, %v5567_v36 }
 0x79a   : > { %v3073_v43 = vpop.f32.mrf.mxu0 }
 0x79b   : > { %v3074_v49 = vadd.f32 %v5567_v36, %v3073_v43 }
 0x7a2   : > { %v4979_v37 = vpop.eup %4978 }
 0x7a3   : > { %v3093_v39 = vadd.f32 1.0, %v4979_v37 }
 0x7a4   : > { %v4981_v40 = vpop.eup %4980 }
 0x7a5   : > { %4984 = vrcp.f32 %v3093_v39  ;;  %v3092_v41 = vadd.f32 1.0, %v4981_v40  ;;  %v4983_v44 = vpop.eup %4982 }
 0x7a6   : > { %4986 = vpow2.f32 %v4196_v38  ;;  %v3109_v62 = vadd.f32 1.0, %v4983_v44 }
 0x7a7   : > { %4988 = vrcp.f32 %v3092_v41 }
 0x7b2   : > { %v4985_v46 = vpop.eup %4984 }
 0x7b3   : > { %v4987_v47 = vpop.eup %4986  ;;  %v3117_v48 = vmul.f32 %v4985_v46, %v3079_v45  ;;  %v3392_v46 = vld [vmem:[#allocation2 + $0x158] sm:$0xff] }
 0x7b4   : > { %v4989_v51 = vpop.eup %4988  ;;  %v3108_v0 = vadd.f32 1.0, %v4987_v47 }
 0x7b5   : > { %v3119_v60 = vadd.f32 %v3117_v48, %v3115_v59  ;;  %v3116_v61 = vmul.f32 %v4989_v51, %v3074_v49  ;;  %v3391_v51 = vld [vmem:[#allocation2 + $0x150] sm:$0xff] }
 0x7b7   : > { %4990 = vtanh.f32 %v3119_v60  ;;  %v3118_v1 = vadd.f32 %v3116_v61, %v3114_v63 }
 0x7b9   : > { %4992 = vtanh.f32 %v3118_v1 }
 0x7ba   : > { %4994 = vrcp.f32 %v3109_v62 }
 0x7bb   : > { %4996 = vrcp.f32 %v3108_v0 }
 0x7c4   : > { %v4991_v2 = vpop.eup %4990 }
 0x7c5   : > { %v3123_v3 = vsub.f32 %v5753_v18, %v4991_v2  ;;  %v3359_v18 = vld [vmem:[#allocation2 + $0x50] sm:$0xff] }
 0x7c6   : > { %v4993_v4 = vpop.eup %4992 }
 0x7c7   : > { %v4995_v7 = vpop.eup %4994  ;;  %v3122_v8 = vsub.f32 %v5751_v17, %v4993_v4 }
 0x7c8   : > { %v4997_v9 = vpop.eup %4996  ;;  %v3125_v10 = vmul.f32 %v4995_v7, %v3123_v3 }
 0x7c9   : > { %v3124_v11 = vmul.f32 %v4997_v9, %v3122_v8  ;;  %v3636_v8 = vld [vmem:[#allocation2 + $0x60] sm:$0xff] }
 0x7ca   : > { %v5797_v13 = vadd.f32 %v4991_v2, %v3125_v10 }
 0x7cb   : > { %v5795_v12 = vadd.f32 %v4993_v4, %v3124_v11 }
 0x7cd   : > { %4758 = vmatprep.mubr.msk.f32.mxu1 %vm531_vm3, %v5795_v12  ;;  %4769 = vmatprep.mubr.msk.f32.mxu0 %vm531_vm3, %v5795_v12 }
 0x7ce   : > { %4759 = vmatmul.mubr.msk.f32.vlgmr.msra.gmra.mxu1 %vm531_vm3, %v5797_v13  ;;  %4770 = vmatmul.mubr.msk.f32.vlgmr.msra.gmra.mxu0 %vm531_vm3, %v5797_v13 }
 0x7cf   : > { %4773 = vmatpush3.msra.mxu1 %v5438_v55  ;;  %4784 = vmatpush3.msra.mxu0 %v5685_v22 }
 0x7d0   : > { %4774 = vmatprep.subr.mxu1 %v5442_v56  ;;  %4780 = vmatprep.mubr.msk.f32.mxu1 %vm531_vm3, %v5795_v12 }
 0x7d1   : > { %4785 = vmatprep.subr.mxu0 %v5712_v28  ;;  %4775 = vmatpush3.msra.mxu1 %v5442_v56 }
 0x7d2   : > { %4786 = vmatpush3.msra.mxu0 %v5712_v28  ;;  %4776 = vmatprep.subr.mxu1 %v5448_v57 }
 0x7d3   : > { %4787 = vmatprep.subr.mxu0 %v5721_v29  ;;  %4777 = vmatpush3.msra.mxu1 %v5448_v57 }
 0x7d4   : > { %4788 = vmatpush3.msra.mxu0 %v5721_v29  ;;  %4778 = vmatprep.subr.mxu1 %v5452_v58 }
 0x7d5   : > { %4789 = vmatprep.subr.mxu0 %v5730_v30  ;;  %4779 = vmatpush3.msra.mxu1 %v5452_v58 }
 0x7d6   : > { %4790 = vmatpush3.msra.mxu0 %v5730_v30  ;;  %4781 = vmatmul.mubr.msk.f32.vlgmr.msra.gmra.mxu1 %vm531_vm3, %v5797_v13 }
 0x7d7   : > { %4794 = vmatprep.subr.mxu1 %v5415_v50  ;;  %4805 = vmatprep.subr.mxu0 %v5438_v55 }
 0x7d8   : > { %4795 = vmatpush3.msra.mxu1 %v5415_v50 }
 0x7d9   : > { %4796 = vmatprep.subr.mxu1 %v5430_v53 }
 0x7da   : > { %4797 = vmatpush3.msra.mxu1 %v5430_v53 }
 0x7db   : > { %4798 = vmatprep.subr.mxu1 %v5422_v52 }
 0x7dc   : > { %4799 = vmatpush3.msra.mxu1 %v5422_v52 }
 0x7dd   : > { %4800 = vmatprep.subr.mxu1 %v5432_v54 }
 0x7de   : > { %4801 = vmatpush3.msra.mxu1 %v5432_v54 }
 0x7df   : > { %4816 = vmatprep.subr.mxu1 %v5685_v22 }
 0x88e   : > { %v4760_v14 = vpop.f32.mrf.mxu1  ;;  %v4771_v24 = vpop.f32.mrf.mxu0 }
 0x88f   : > { %v3362_v16 = vadd.f32 %v4760_v14, %v3360_v15  ;;  %v3378_v32 = vadd.f32 %v4771_v24, %v3376_v27  ;;  %v3652_v14 = vld [vmem:[#allocation2 + $0xe0] sm:$0xff] }
 0x890   : > { %v3200_v17 = vpop.f32.mrf.mxu1  ;;  %v3275_v31 = vpop.f32.mrf.mxu0  ;;  %v5881_v27 = vld [vmem:[%s6012_s7] ss:$0 sm:$0xff] }
 0x891   : > { %v4205_v19 = vmul.f32 -1.442695, %v3362_v16  ;;  %v3361_v20 = vadd.f32 %v3359_v18, %v3200_v17  ;;  %v3377_v34 = vadd.f32 %v3375_v33, %v3275_v31  ;;  %v4207_v35 = vmul.f32 -1.442695, %v3378_v32 }
 0x893   : > { %4998 = vpow2.f32 %v4205_v19  ;;  %v4204_v21 = vmul.f32 -1.442695, %v3361_v20  ;;  %v4206_v25 = vmul.f32 -1.442695, %v3377_v34 }
 0x895   : > { %5000 = vpow2.f32 %v4204_v21 }
 0x896   : > { %5002 = vpow2.f32 %v4207_v35  ;;  %v4782_v37 = vpop.f32.mrf.mxu1 }
 0x897   : > { %v3356_v40 = vadd.f32 %v4782_v37, %v5567_v36  ;;  %v3668_v37 = vld [vmem:[#allocation2 + $0x160] sm:$0xff] }
 0x898   : > { %v3350_v38 = vpop.f32.mrf.mxu1 }
 0x899   : > { %v3351_v44 = vadd.f32 %v5567_v36, %v3350_v38 }
 0x8a0   : > { %v4999_v23 = vpop.eup %4998 }
 0x8a1   : > { %v3370_v26 = vadd.f32 1.0, %v4999_v23 }
 0x8a2   : > { %v5001_v5 = vpop.eup %5000 }
 0x8a3   : > { %5004 = vrcp.f32 %v3370_v26  ;;  %v3369_v6 = vadd.f32 1.0, %v5001_v5  ;;  %v5003_v39 = vpop.eup %5002 }
 0x8a4   : > { %5006 = vpow2.f32 %v4206_v25  ;;  %v3386_v49 = vadd.f32 1.0, %v5003_v39  ;;  %v3669_v25 = vld [vmem:[#allocation2 + $0x168] sm:$0xff] }
 0x8a5   : > { %5008 = vrcp.f32 %v3369_v6 }
 0x8b0   : > { %v5005_v41 = vpop.eup %5004 }
 0x8b1   : > { %v5007_v42 = vpop.eup %5006  ;;  %v3394_v43 = vmul.f32 %v5005_v41, %v3356_v40 }
 0x8b2   : > { %v5009_v45 = vpop.eup %5008  ;;  %v3385_v59 = vadd.f32 1.0, %v5007_v42 }
 0x8b3   : > { %v3396_v47 = vadd.f32 %v3394_v43, %v3392_v46  ;;  %v3393_v48 = vmul.f32 %v5009_v45, %v3351_v44 }
 0x8b5   : > { %5010 = vtanh.f32 %v3396_v47  ;;  %v3395_v60 = vadd.f32 %v3393_v48, %v3391_v51 }
 0x8b7   : > { %5012 = vtanh.f32 %v3395_v60 }
 0x8b8   : > { %5014 = vrcp.f32 %v3386_v49 }
 0x8b9   : > { %5016 = vrcp.f32 %v3385_v59 }
 0x8c2   : > { %v5011_v61 = vpop.eup %5010 }
 0x8c3   : > { %v3400_v62 = vsub.f32 %v5797_v13, %v5011_v61 }
 0x8c4   : > { %v5013_v63 = vpop.eup %5012 }
 0x8c5   : > { %v5015_v0 = vpop.eup %5014  ;;  %v3399_v1 = vsub.f32 %v5795_v12, %v5013_v63 }
 0x8c6   : > { %v5017_v36 = vpop.eup %5016  ;;  %v3402_v2 = vmul.f32 %v5015_v0, %v3400_v62 }
 0x8c7   : > { %v3401_v3 = vmul.f32 %v5017_v36, %v3399_v1 }
 0x8c8   : > { %v5841_v7 = vadd.f32 %v5011_v61, %v3402_v2 }
 0x8c9   : > { %v5839_v4 = vadd.f32 %v5013_v63, %v3401_v3 }
 0x8cb   : > { %4791 = vmatprep.mubr.msk.f32.mxu0 %vm531_vm3, %v5839_v4  ;;  %4802 = vmatprep.mubr.msk.f32.mxu1 %vm531_vm3, %v5839_v4 }
 0x8cc   : > { %4792 = vmatmul.mubr.msk.f32.vlgmr.msra.gmra.mxu0 %vm531_vm3, %v5841_v7  ;;  %4803 = vmatmul.mubr.msk.f32.vlgmr.msra.gmra.mxu1 %vm531_vm3, %v5841_v7 }
 0x8cd   : > { %4806 = vmatpush3.msra.mxu0 %v5438_v55  ;;  %4817 = vmatpush3.msra.mxu1 %v5685_v22 }
 0x8ce   : > { %4807 = vmatprep.subr.mxu0 %v5442_v56  ;;  %4813 = vmatprep.mubr.msk.f32.mxu0 %vm531_vm3, %v5839_v4 }
 0x8cf   : > { %4818 = vmatprep.subr.mxu1 %v5712_v28  ;;  %4808 = vmatpush3.msra.mxu0 %v5442_v56 }
 0x8d0   : > { %4819 = vmatpush3.msra.mxu1 %v5712_v28  ;;  %4809 = vmatprep.subr.mxu0 %v5448_v57  ;;  %v3637_v28 = vld [vmem:[#allocation2 + $0x68] sm:$0xff] }
 0x8d1   : > { %4820 = vmatprep.subr.mxu1 %v5721_v29  ;;  %4810 = vmatpush3.msra.mxu0 %v5448_v57 }
 0x8d2   : > { %4821 = vmatpush3.msra.mxu1 %v5721_v29  ;;  %4811 = vmatprep.subr.mxu0 %v5452_v58 }
 0x8d3   : > { %4822 = vmatprep.subr.mxu1 %v5730_v30  ;;  %4812 = vmatpush3.msra.mxu0 %v5452_v58 }
 0x8d4   : > { %4823 = vmatpush3.msra.mxu1 %v5730_v30  ;;  %4814 = vmatmul.mubr.msk.f32.vlgmr.msra.gmra.mxu0 %vm531_vm3, %v5841_v7 }
 0x8d5   : > { %4827 = vmatprep.subr.mxu0 %v5415_v50  ;;  %4838 = vmatprep.subr.mxu1 %v5438_v55 }
 0x8d6   : > { %4828 = vmatpush3.msra.mxu0 %v5415_v50 }
 0x8d7   : > { %4829 = vmatprep.subr.mxu0 %v5430_v53 }
 0x8d8   : > { %4830 = vmatpush3.msra.mxu0 %v5430_v53  ;;  %v3653_v53 = vld [vmem:[#allocation2 + $0xe8] sm:$0xff] }
 0x8d9   : > { %4831 = vmatprep.subr.mxu0 %v5422_v52 }
 0x8da   : > { %4832 = vmatpush3.msra.mxu0 %v5422_v52 }
 0x8db   : > { %4833 = vmatprep.subr.mxu0 %v5432_v54 }
 0x8dc   : > { %4834 = vmatpush3.msra.mxu0 %v5432_v54 }
 0x98c   : > { %v4793_v22 = vpop.f32.mrf.mxu0  ;;  %v4804_v11 = vpop.f32.mrf.mxu1 }
 0x98d   : > { %v3639_v29 = vadd.f32 %v4793_v22, %v3637_v28  ;;  %v3655_v13 = vadd.f32 %v4804_v11, %v3653_v53 }
 0x98e   : > { %v3477_v30 = vpop.f32.mrf.mxu0  ;;  %v3552_v12 = vpop.f32.mrf.mxu1 }
 0x98f   : > { %v4215_v9 = vmul.f32 -1.442695, %v3639_v29  ;;  %v3638_v10 = vadd.f32 %v3636_v8, %v3477_v30  ;;  %v3654_v52 = vadd.f32 %v3652_v14, %v3552_v12  ;;  %v4217_v15 = vmul.f32 -1.442695, %v3655_v13 }
 0x991   : > { %5018 = vpow2.f32 %v4215_v9  ;;  %v4214_v50 = vmul.f32 -1.442695, %v3638_v10  ;;  %v4216_v17 = vmul.f32 -1.442695, %v3654_v52 }
 0x993   : > { %5020 = vpow2.f32 %v4214_v50 }
 0x994   : > { %5022 = vpow2.f32 %v4217_v15  ;;  %v4815_v20 = vpop.f32.mrf.mxu0 }
 0x995   : > { %v3633_v31 = vadd.f32 %v5881_v27, %v4815_v20 }
 0x996   : > { %v3627_v21 = vpop.f32.mrf.mxu0 }
 0x997   : > { %v3628_v35 = vadd.f32 %v5881_v27, %v3627_v21 }
 0x99e   : > { %v5019_v16 = vpop.eup %5018 }
 0x99f   : > { %v3647_v54 = vadd.f32 1.0, %v5019_v16 }
 0x9a0   : > { %v5021_v18 = vpop.eup %5020 }
 0x9a1   : > { %5024 = vrcp.f32 %v3647_v54  ;;  %v3646_v19 = vadd.f32 1.0, %v5021_v18  ;;  %v5023_v24 = vpop.eup %5022 }
 0x9a2   : > { %5026 = vpow2.f32 %v4216_v17  ;;  %v3663_v6 = vadd.f32 1.0, %v5023_v24 }
 0x9a3   : > { %5028 = vrcp.f32 %v3646_v19 }
 0x9ae   : > { %v5025_v32 = vpop.eup %5024 }
 0x9af   : > { %v5027_v33 = vpop.eup %5026  ;;  %v3671_v34 = vmul.f32 %v5025_v32, %v3633_v31 }
 0x9b0   : > { %v5029_v23 = vpop.eup %5028  ;;  %v3662_v38 = vadd.f32 1.0, %v5027_v33 }
 0x9b1   : > { %v3673_v26 = vadd.f32 %v3671_v34, %v3669_v25  ;;  %v3670_v5 = vmul.f32 %v5029_v23, %v3628_v35 }
 0x9b3   : > { %5030 = vtanh.f32 %v3673_v26  ;;  %v3672_v39 = vadd.f32 %v3670_v5, %v3668_v37 }
 0x9b5   : > { %5032 = vtanh.f32 %v3672_v39 }
 0x9b6   : > { %5034 = vrcp.f32 %v3663_v6 }
 0x9b7   : > { %5036 = vrcp.f32 %v3662_v38 }
 0x9c0   : > { %v5031_v40 = vpop.eup %5030 }
 0x9c1   : > { %v3677_v41 = vsub.f32 %v5841_v7, %v5031_v40 }
 0x9c2   : > { %v5033_v42 = vpop.eup %5032 }
 0x9c3   : > { %v5035_v43 = vpop.eup %5034  ;;  %v3676_v44 = vsub.f32 %v5839_v4, %v5033_v42 }
 0x9c4   : > { %v5037_v45 = vpop.eup %5036  ;;  %v3679_v46 = vmul.f32 %v5035_v43, %v3677_v41 }
 0x9c5   : > { %v3678_v47 = vmul.f32 %v5037_v45, %v3676_v44 }
 0x9c6   : > { %v5889_v49 = vadd.f32 %v5031_v40, %v3679_v46 }
 0x9c7   : > { %v5887_v48 = vadd.f32 %v5033_v42, %v3678_v47 }
 0x9c9   : > { %4824 = vmatprep.mubr.msk.f32.mxu1 %vm531_vm3, %v5887_v48  ;;  %4835 = vmatprep.mubr.msk.f32.mxu0 %vm531_vm3, %v5887_v48 }
 0x9ca   : > { %4825 = vmatmul.mubr.msk.f32.vlgmr.msra.gmra.mxu1 %vm531_vm3, %v5889_v49  ;;  %4836 = vmatmul.mubr.msk.f32.vlgmr.msra.gmra.mxu0 %vm531_vm3, %v5889_v49 }
 0x9cb   : > { %4839 = vmatpush3.msra.mxu1 %v5438_v55  ;;  %4846 = vmatprep.mubr.msk.f32.mxu1 %vm531_vm3, %v5887_v48 }
 0x9cc   : > { %4840 = vmatprep.subr.mxu1 %v5442_v56 }
 0x9cd   : > { %4841 = vmatpush3.msra.mxu1 %v5442_v56 }
 0x9ce   : > { %4842 = vmatprep.subr.mxu1 %v5448_v57 }
 0x9cf   : > { %4843 = vmatpush3.msra.mxu1 %v5448_v57 }
 0x9d0   : > { %4844 = vmatprep.subr.mxu1 %v5452_v58 }
 0x9d1   : > { %4845 = vmatpush3.msra.mxu1 %v5452_v58 }
 0x9d2   : > { %4847 = vmatmul.mubr.msk.f32.vlgmr.msra.gmra.mxu1 %vm531_vm3, %v5889_v49 }
 0x9d3   : > { %5076 = shalt.err (!%p5073_p3)
}
 0x9d4   : > { %s5077_s27 = scalar_lea.hbm %s5919_s17, 256  ;;  %s5081_s22 = scalar_lea.hbm %s6014_s9, 512 }
 0x9d5   : > { %p5078_p4 = scmp.ne.s32.totalorder %s5919_s17, %s5077_s27  ;;  %p5082_p9 = scmp.lt.s32.totalorder %s5919_s17, %s6014_s9 }
 0x9d6   : > { %p5083_p10 = scmp.lt.s32.totalorder %s5081_s22, %s5077_s27 }
 0x9d7   : > { %p5079_p7 = pnand %p5078_p4, %p5250_p5 }
 0x9d8   : > { %p5084_p11 = por %p5083_p10, %p5082_p9 }
 0x9d9   : > { %p5080_p8 = pneg %p5079_p7 }
 0x9db   : > { %p5085_p12 = pnand %p5084_p11, %p5080_p8 }
 0x9dd   : > { %5088 = shalt.err (!%p5085_p12)
}
 0x9de   : > { %s6017_s26 = smov 128   ;;  %s5160_s16 = smov 8   ;;  %v3914_v56 = vld [vmem:[#allocation2 + $0x78] sm:$0xff]  ;;  %v3913_v51 = vld [vmem:[#allocation2 + $0x70] sm:$0xff] }
 0x9df   : > { %s6020_s25 = scalar_lea.sflag [#allocation6], %s5376_s29  ;;  %v3930_v63 = vld [vmem:[#allocation2 + $0xf8] sm:$0xff]  ;;  %v3929_v36 = vld [vmem:[#allocation2 + $0xf0] sm:$0xff]  ;;  %s6021_s14 = sshll.u32 %s5376_s29, 4 }
 0x9e0   : > { %4850 = dma.vmem_to_hbm [thread:$0]  (%p5250_p5), %s5912_s24, 256, %s5919_s17, %s6020_s25, %s6017_s26, %s6017_s26, %s5160_s16   ;;  %v3946_v52 = vld [vmem:[#allocation2 + $0x178] sm:$0xff]  ;;  %v3945_v17 = vld [vmem:[#allocation2 + $0x170] sm:$0xff] }
 0x9e1   : > { %s329_s24 = scalar_lea.vmem [#allocation3], %s6021_s14  ;;  %s6022_s21 = sshll.u32 %s5233_s13, 8 }
 0x9e2   : > { %s3980_s17 = sshll.u32 %s329_s24, 4  ;;  %s5959_s28 = scalar_lea.hbm %s6013_s8, %s6022_s21  ;;  %s5961_s17 = int_to_ptr.vmem [resolvable:$true] %s3980_s17 }
 0x9e3   : > { %s3962_s22 = scalar_lea.sflag [#allocation4], %s5376_s29  ;;  %s5089_s25 = scalar_lea.vmem %s5961_s17, 256 }
 0x9e4   : > { %p5090_p13 = scmp.ne.s32.totalorder %s5961_s17, %s5089_s25  ;;  %s5161_s14 = smov [#allocation3]  }
 0x9e5   : > { %s5093_s13 = sshll.u32 %s5161_s14, 4  ;;  %s5094_s13 = int_to_ptr.vmem [resolvable:$false] %s5093_s13 }
 0x9e6   : > { %p5091_p0 = pnand %p5090_p13, %p5250_p5  ;;  %s5095_s26 = scalar_lea.vmem %s5094_s13, 512 }
 0x9e7   : > { %p5096_p2 = scmp.lt.s32.totalorder %s5961_s17, %s5094_s13  ;;  %p5097_p3 = scmp.lt.s32.totalorder %s5095_s26, %s5089_s25 }
 0x9e8   : > { %p5092_p1 = pneg %p5091_p0 }
 0x9e9   : > { %p5098_p4 = por %p5097_p3, %p5096_p2 }
 0x9eb   : > { %p5099_p7 = pnand %p5098_p4, %p5092_p1 }
 0xa8a   : > { %v4826_v55 = vpop.f32.mrf.mxu1  ;;  %v4837_v62 = vpop.f32.mrf.mxu0 }
 0xa8b   : > { %v3916_v57 = vadd.f32 %v4826_v55, %v3914_v56  ;;  %v3932_v1 = vadd.f32 %v4837_v62, %v3930_v63 }
 0xa8c   : > { %v3754_v58 = vpop.f32.mrf.mxu1  ;;  %v3829_v0 = vpop.f32.mrf.mxu0 }
 0xa8d   : > { %v4225_v59 = vmul.f32 -1.442695, %v3916_v57  ;;  %v3915_v60 = vadd.f32 %v3913_v51, %v3754_v58  ;;  %v3931_v2 = vadd.f32 %v3929_v36, %v3829_v0  ;;  %v4227_v3 = vmul.f32 -1.442695, %v3932_v1 }
 0xa8f   : > { %5038 = vpow2.f32 %v4225_v59  ;;  %v4224_v61 = vmul.f32 -1.442695, %v3915_v60  ;;  %v4226_v7 = vmul.f32 -1.442695, %v3931_v2 }
 0xa91   : > { %5040 = vpow2.f32 %v4224_v61 }
 0xa92   : > { %5042 = vpow2.f32 %v4227_v3  ;;  %v4848_v30 = vpop.f32.mrf.mxu1 }
 0xa93   : > { %v3910_v10 = vadd.f32 %v5881_v27, %v4848_v30 }
 0xa94   : > { %v3904_v8 = vpop.f32.mrf.mxu1 }
 0xa95   : > { %v3905_v12 = vadd.f32 %v5881_v27, %v3904_v8 }
 0xa9c   : > { %v5039_v4 = vpop.eup %5038 }
 0xa9d   : > { %v3924_v22 = vadd.f32 1.0, %v5039_v4 }
 0xa9e   : > { %v5041_v28 = vpop.eup %5040 }
 0xa9f   : > { %5044 = vrcp.f32 %v3924_v22  ;;  %v3923_v29 = vadd.f32 1.0, %v5041_v28  ;;  %v5043_v9 = vpop.eup %5042 }
 0xaa0   : > { %5046 = vpow2.f32 %v4226_v7  ;;  %v3940_v14 = vadd.f32 1.0, %v5043_v9 }
 0xaa1   : > { %5048 = vrcp.f32 %v3923_v29 }
 0xaac   : > { %v5045_v50 = vpop.eup %5044 }
 0xaad   : > { %v5047_v11 = vpop.eup %5046  ;;  %v3948_v53 = vmul.f32 %v5045_v50, %v3910_v10 }
 0xaae   : > { %v5049_v13 = vpop.eup %5048  ;;  %v3939_v54 = vadd.f32 1.0, %v5047_v11 }
 0xaaf   : > { %v3950_v15 = vadd.f32 %v3948_v53, %v3946_v52  ;;  %v3947_v16 = vmul.f32 %v5049_v13, %v3905_v12 }
 0xab1   : > { %5050 = vtanh.f32 %v3950_v15  ;;  %v3949_v18 = vadd.f32 %v3947_v16, %v3945_v17 }
 0xab2   : > { %5052 = vrcp.f32 %v3940_v14 }
 0xab3   : > { %5054 = vtanh.f32 %v3949_v18 }
 0xab4   : > { %5056 = vrcp.f32 %v3939_v54 }
 0xabe   : > { %v5051_v19 = vpop.eup %5050 }
 0xabf   : > { %v5053_v20 = vpop.eup %5052  ;;  %v3954_v21 = vsub.f32 %v5889_v49, %v5051_v19 }
 0xac0   : > { %v5055_v24 = vpop.eup %5054 }
 0xac1   : > { %v3953_v27 = vsub.f32 %v5887_v48, %v5055_v24  ;;  %v3956_v31 = vmul.f32 %v5053_v20, %v3954_v21  ;;  %v5057_v32 = vpop.eup %5056 }
 0xac3   : > { %v3955_v33 = vmul.f32 %v5057_v32, %v3953_v27  ;;  %v3958_v34 = vadd.f32 %v5051_v19, %v3956_v31 }
 0xac5   : > { %v3957_v35 = vadd.f32 %v5055_v24, %v3955_v33  ;;  %3960 = vst.msk [vmem:[%s329_s24 + $0x8] sm:$0xff] %vm531_vm3, %v3958_v34 }
 0xac7   : > { %3959 = vst.msk [vmem:[%s329_s24] sm:$0xff] %vm531_vm3, %v3957_v35 }
 0xac8   : > { %5102 = shalt.err (!%p5099_p7)
}
 0xac9   : > { %s5103_s24 = scalar_lea.hbm %s5959_s28, 256  ;;  %s5107_s23 = scalar_lea.hbm %s6013_s8, 512 }
 0xaca   : > { %p5104_p8 = scmp.ne.s32.totalorder %s5959_s28, %s5103_s24  ;;  %p5108_p11 = scmp.lt.s32.totalorder %s5959_s28, %s6013_s8 }
 0xacb   : > { %p5109_p12 = scmp.lt.s32.totalorder %s5107_s23, %s5103_s24 }
 0xacc   : > { %p5105_p9 = pnand %p5104_p8, %p5250_p5 }
 0xacd   : > { %p5110_p13 = por %p5109_p12, %p5108_p11 }
 0xace   : > { %p5106_p10 = pneg %p5105_p9 }
 0xad0   : > { %p5111_p0 = pnand %p5110_p13, %p5106_p10 }
 0xad2   : > { %5114 = shalt.err (!%p5111_p0)
}
 0xad3   : > { %s6023_s26 = smov 128  }
 0xad4   : > { %4849 = dma.vmem_to_hbm [thread:$0]  (%p5250_p5), %s5961_s17, 256, %s5959_s28, %s3962_s22, %s6023_s26, %s6023_s26, %s5160_s16  }
 0xad5 PF: > { %p4860_p1 = scmp.ge.s32.totalorder %s5153_s12, 2  ;;  %s4011_s25 = sand.u32 1, %s5141_s30  }
 0xad6   : > { %s4012_s13 = scalar_lea.sflag [#allocation4], %s4011_s25 }
 0xad7   : > { %p4854_p2 = pnand %p4860_p1, %p5254_p6 }
 0xad9   : > { %p4855_p3 = pneg %p4854_p2 }
 0xadb   : > { %5132 = dma.done.wait (%p4855_p3), %s4012_s13, 256  }
 0xadc   : > { %5134 = vsyncadd (%p4855_p3), %s4012_s13, 4294967040  ;;  %s4021_s24 = scalar_lea.sflag [#allocation6], %s4011_s25 }
 0xadd   : > { %5136 = dma.done.wait (%p4855_p3), %s4021_s24, 256  }
 0xade   : > { %5138 = vsyncadd (%p4855_p3), %s4021_s24, 4294967040  ;;  %p23_p5 = scmp.ge.s32.totalorder %s5237_s15, 4   ;;  %s6024_s30 = smov %s5145_s10 }
 0xadf   : > { %s6025_s10 = smov %s5149_s11  ;;  %s6026_s11 = smov %s5248_s18 }
 0xae0   : > { %s6027_s12 = smov %s5237_s15  ;;  %25 = sbr.rel (!%p23_p5) target bundleno = 5 (0x5), region = 106 }
 0xae5   :  { %4026 = vsyncpa [#allocation4], 1 }
 0xae6   :  { %4028 = vsyncpa [#allocation4 + $0x1], 1 }
 0xae7   :  { %4029 = vsyncpa [#allocation6], 1 }
 0xae8   :  { %4031 = vsyncpa [#allocation6 + $0x1], 1 }

</bundles_post_ra>
